<compile_context>
chip_gen: v6e
topology: v6e:2x2x1
jax: 0.10.0
libtpu: 0.0.40
codegen_flags: <defaults>
</compile_context>

<pallas_src>
import jax
import jax.numpy as jnp
from jax.experimental import pallas as pl
from jax.experimental.pallas import tpu as pltpu


def lstm_kernel(gx_ref, whh_ref, wlin_ref, blin_ref, pred_ref):
    """Single invocation: full LSTM recurrence (unrolled) + final Linear.

    gx_ref:   (4, S, B, H)  per-gate precomputed x@W_ih^T + (b_ih+b_hh)
    whh_ref:  (4, H, H)     per-gate recurrent weights, pre-transposed (W_hh_g^T)
    wlin_ref: (H, Op)       W_lin^T, output padded to Op=ceil(O/128)*128 (zero cols)
    blin_ref: (1, Op)       b_lin, zero padded
    pred_ref: (S, Op)       lane-dense output; wrapper slices [:, :O]
    """
    _, S, B, H = gx_ref.shape

    # Hoist all weight loads out of the unrolled recurrence: one VMEM->vreg
    # transfer each, RHS stays hot across all S steps.
    whh_i = whh_ref[0]
    whh_f = whh_ref[1]
    whh_g = whh_ref[2]
    whh_o = whh_ref[3]
    wlin = wlin_ref[...]
    blin = blin_ref[...]

    h = jnp.zeros((B, H), jnp.float32)
    c = jnp.zeros((B, H), jnp.float32)

    last_rows = []
    for t in range(S):  # S is static & small: fully unrolled serial recurrence.
        # Four small per-gate dots; every gate result is lane-aligned at offset 0,
        # so no lane rotates sit on the serial critical chain.
        i_g = jax.nn.sigmoid(
            gx_ref[0, t] + jnp.dot(h, whh_i, preferred_element_type=jnp.float32))
        f_g = jax.nn.sigmoid(
            gx_ref[1, t] + jnp.dot(h, whh_f, preferred_element_type=jnp.float32))
        g_g = jnp.tanh(
            gx_ref[2, t] + jnp.dot(h, whh_g, preferred_element_type=jnp.float32))
        o_g = jax.nn.sigmoid(
            gx_ref[3, t] + jnp.dot(h, whh_o, preferred_element_type=jnp.float32))
        c = f_g * c + i_g * g_g
        h = o_g * jnp.tanh(c)
        # predictions use lstm_out[:, -1, :] == last *batch* row at every step
        # (faithful to the PyTorch module, batch_first=False).
        last_rows.append(h[B - 1:B, :])

    hs = jnp.concatenate(last_rows, axis=0)          # (S, H), lane-dense
    pred_ref[...] = (jnp.dot(hs, wlin, preferred_element_type=jnp.float32)
                     + blin).astype(pred_ref.dtype)


def _lstm_forward(x, w_ih, w_hh, b_ih, b_hh, w_lin, b_lin):
    """x: (S, B, I) float32. Returns (S, O) float32, matching the PyTorch module."""
    S, B, I = x.shape
    H = w_hh.shape[1]
    O = w_lin.shape[0]
    Op = ((O + 127) // 128) * 128                    # lane-dense output width

    # ---- Hoisted off the serial path: input projection + bias fold (no h dependence).
    gx = x.reshape(S * B, I).astype(jnp.float32) @ w_ih.T.astype(jnp.float32)
    gx = gx + (b_ih + b_hh).astype(jnp.float32)                   # (S*B, 4H)
    gx = gx.reshape(S, B, 4, H).transpose(2, 0, 1, 3)             # (4, S, B, H)

    # Recurrent weights: (4H, H) -> per-gate transposed blocks (4, H, H), NO padding.
    whh = jnp.transpose(w_hh.reshape(4, H, H), (0, 2, 1)).astype(jnp.float32)

    # Output projection: (O, H) -> (H, Op) with zero-padded columns (unmasked stores).
    wlin = jnp.pad(w_lin.T.astype(jnp.float32), ((0, 0), (0, Op - O)))
    blin = jnp.pad(b_lin.astype(jnp.float32), (0, Op - O)).reshape(1, Op)

    pred = pl.pallas_call(
        lstm_kernel,
        out_shape=jax.ShapeDtypeStruct((S, Op), jnp.float32),
        grid_spec=pltpu.PrefetchScalarGridSpec(
            num_scalar_prefetch=0,
            grid=(1,),                               # single invocation; loop is in-kernel
            in_specs=[
                pl.BlockSpec((4, S, B, H), lambda i: (0, 0, 0, 0)),   # gx (per-gate)
                pl.BlockSpec((4, H, H), lambda i: (0, 0, 0)),         # W_hh^T blocks
                pl.BlockSpec((H, Op), lambda i: (0, 0)),              # W_lin^T (padded)
                pl.BlockSpec((1, Op), lambda i: (0, 0)),              # b_lin (padded)
            ],
            out_specs=pl.BlockSpec((S, Op), lambda i: (0, 0)),
        ),
        compiler_params=pltpu.CompilerParams(
            dimension_semantics=("arbitrary",),      # recurrence -> sequential
        ),
    )(gx, whh, wlin, blin)

    return pred[:, :O].astype(x.dtype)


lstm_forward = jax.jit(_lstm_forward)


def lstm_ref(x, w_ih, w_hh, b_ih, b_hh, w_lin, b_lin):
    """Pure-JAX reference replicating PyTorch nn.LSTM + forward exactly."""
    S, B, _ = x.shape
    H = w_hh.shape[1]
    h = jnp.zeros((B, H), jnp.float32)
    c = jnp.zeros((B, H), jnp.float32)
    outs = []
    for t in range(S):
        gates = x[t] @ w_ih.T + h @ w_hh.T + b_ih + b_hh
        i_g = jax.nn.sigmoid(gates[:, 0 * H:1 * H])
        f_g = jax.nn.sigmoid(gates[:, 1 * H:2 * H])
        g_g = jnp.tanh(gates[:, 2 * H:3 * H])
        o_g = jax.nn.sigmoid(gates[:, 3 * H:4 * H])
        c = f_g * c + i_g * g_g
        h = o_g * jnp.tanh(c)
        outs.append(h)
    lstm_out = jnp.stack(outs)              # (S, B, H)
    last = lstm_out[:, -1, :]               # (S, H) -- last batch element
    return last @ w_lin.T + b_lin           # (S, O)


if __name__ == "__main__":
    # Small shapes consistent with the module (input_size=1, output_size=1).
    S, B, I, H, O = 8, 4, 1, 32, 1

    key = jax.random.PRNGKey(0)
    ks = jax.random.split(key, 7)
    k_init = 1.0 / jnp.sqrt(jnp.float32(H))

    x = jax.random.normal(ks[0], (S, B, I), dtype=jnp.float32)
    w_ih = jax.random.uniform(ks[1], (4 * H, I), jnp.float32, -k_init, k_init)
    w_hh = jax.random.uniform(ks[2], (4 * H, H), jnp.float32, -k_init, k_init)
    b_ih = jax.random.uniform(ks[3], (4 * H,), jnp.float32, -k_init, k_init)
    b_hh = jax.random.uniform(ks[4], (4 * H,), jnp.float32, -k_init, k_init)
    w_lin = jax.random.uniform(ks[5], (O, H), jnp.float32, -k_init, k_init)
    b_lin = jax.random.uniform(ks[6], (O,), jnp.float32, -k_init, k_init)

    preds = lstm_forward(x, w_ih, w_hh, b_ih, b_hh, w_lin, b_lin)
    preds = jax.block_until_ready(preds)

    ref = lstm_ref(x, w_ih, w_hh, b_ih, b_hh, w_lin, b_lin)
    assert preds.shape == (S, O), preds.shape
    assert jnp.allclose(preds, ref, atol=1e-5, rtol=1e-5), (
        f"max err {jnp.max(jnp.abs(preds - ref))}")

    print("KERNEL_OK")
</pallas_src>

<mosaic_0001>
module attributes {stable_mosaic.version = 11 : i64} {
  func.func @lstm_kernel(%arg0: i32, %arg1: memref<4x8x4x32xf32, #tpu.memory_space<vmem>>, %arg2: memref<4x32x32xf32, #tpu.memory_space<vmem>>, %arg3: memref<32x128xf32, #tpu.memory_space<vmem>>, %arg4: memref<1x128xf32, #tpu.memory_space<vmem>>, %arg5: memref<8x128xf32, #tpu.memory_space<vmem>>) attributes {dimension_semantics = [#tpu.dimension_semantics<arbitrary>], iteration_bounds = array<i64: 1>, scalar_prefetch = 0 : i64, scratch_operands = 0 : i64, tpu.core_type = #tpu.core_type<tc>, window_params = [{pipeline_mode = #tpu.pipeline_mode<synchronous>, transform_indices = @transform_0, window_bounds = array<i64: 4, 8, 4, 32>}, {pipeline_mode = #tpu.pipeline_mode<synchronous>, transform_indices = @transform_1, window_bounds = array<i64: 4, 32, 32>}, {pipeline_mode = #tpu.pipeline_mode<synchronous>, transform_indices = @transform_2, window_bounds = array<i64: 32, 128>}, {pipeline_mode = #tpu.pipeline_mode<synchronous>, transform_indices = @transform_3, window_bounds = array<i64: 1, 128>}, {pipeline_mode = #tpu.pipeline_mode<synchronous>, transform_indices = @transform_4, window_bounds = array<i64: 8, 128>}]} {
    %c0 = arith.constant 0 : index
    %c0_0 = arith.constant 0 : index
    %c0_1 = arith.constant 0 : index
    %0 = vector.load %arg2[%c0, %c0_0, %c0_1] : memref<4x32x32xf32, #tpu.memory_space<vmem>>, vector<1x32x32xf32>
    %1 = vector.shape_cast %0 : vector<1x32x32xf32> to vector<32x32xf32>
    %c1 = arith.constant 1 : index
    %c0_2 = arith.constant 0 : index
    %c0_3 = arith.constant 0 : index
    %2 = vector.load %arg2[%c1, %c0_2, %c0_3] : memref<4x32x32xf32, #tpu.memory_space<vmem>>, vector<1x32x32xf32>
    %3 = vector.shape_cast %2 : vector<1x32x32xf32> to vector<32x32xf32>
    %c2 = arith.constant 2 : index
    %c0_4 = arith.constant 0 : index
    %c0_5 = arith.constant 0 : index
    %4 = vector.load %arg2[%c2, %c0_4, %c0_5] : memref<4x32x32xf32, #tpu.memory_space<vmem>>, vector<1x32x32xf32>
    %5 = vector.shape_cast %4 : vector<1x32x32xf32> to vector<32x32xf32>
    %c3 = arith.constant 3 : index
    %c0_6 = arith.constant 0 : index
    %c0_7 = arith.constant 0 : index
    %6 = vector.load %arg2[%c3, %c0_6, %c0_7] : memref<4x32x32xf32, #tpu.memory_space<vmem>>, vector<1x32x32xf32>
    %7 = vector.shape_cast %6 : vector<1x32x32xf32> to vector<32x32xf32>
    %c0_8 = arith.constant 0 : index
    %c0_9 = arith.constant 0 : index
    %8 = vector.load %arg3[%c0_8, %c0_9] : memref<32x128xf32, #tpu.memory_space<vmem>>, vector<32x128xf32>
    %c0_10 = arith.constant 0 : index
    %c0_11 = arith.constant 0 : index
    %9 = vector.load %arg4[%c0_10, %c0_11] : memref<1x128xf32, #tpu.memory_space<vmem>>, vector<1x128xf32>
    %cst = arith.constant 0.000000e+00 : f32
    %10 = vector.broadcast %cst : f32 to vector<4x32xf32>
    %cst_12 = arith.constant 0.000000e+00 : f32
    %11 = vector.broadcast %cst_12 : f32 to vector<4x32xf32>
    %c0_13 = arith.constant 0 : index
    %c0_14 = arith.constant 0 : index
    %c0_15 = arith.constant 0 : index
    %c0_16 = arith.constant 0 : index
    %12 = vector.load %arg1[%c0_13, %c0_14, %c0_15, %c0_16] : memref<4x8x4x32xf32, #tpu.memory_space<vmem>>, vector<1x1x4x32xf32>
    %13 = vector.shape_cast %12 : vector<1x1x4x32xf32> to vector<4x32xf32>
    %cst_17 = arith.constant dense<0.000000e+00> : vector<4x32xf32>
    %14 = tpu.matmul %10, %1, %cst_17 {dimension_numbers = #tpu.dot_dimension_numbers<[1], [0], [0], [1], [0, 0, 1, 1], [], []>} : vector<4x32xf32>, vector<32x32xf32>, vector<4x32xf32> -> vector<4x32xf32>
    %15 = arith.addf %13, %14 : vector<4x32xf32>
    %16 = arith.negf %15 : vector<4x32xf32>
    %17 = math.exp %16 : vector<4x32xf32>
    %cst_18 = arith.constant 1.000000e+00 : f32
    %18 = vector.broadcast %cst_18 : f32 to vector<4x32xf32>
    %19 = arith.addf %18, %17 : vector<4x32xf32>
    %20 = arith.divf %18, %19 : vector<4x32xf32>
    %c1_19 = arith.constant 1 : index
    %c0_20 = arith.constant 0 : index
    %c0_21 = arith.constant 0 : index
    %c0_22 = arith.constant 0 : index
    %21 = vector.load %arg1[%c1_19, %c0_20, %c0_21, %c0_22] : memref<4x8x4x32xf32, #tpu.memory_space<vmem>>, vector<1x1x4x32xf32>
    %22 = vector.shape_cast %21 : vector<1x1x4x32xf32> to vector<4x32xf32>
    %cst_23 = arith.constant dense<0.000000e+00> : vector<4x32xf32>
    %23 = tpu.matmul %10, %3, %cst_23 {dimension_numbers = #tpu.dot_dimension_numbers<[1], [0], [0], [1], [0, 0, 1, 1], [], []>} : vector<4x32xf32>, vector<32x32xf32>, vector<4x32xf32> -> vector<4x32xf32>
    %24 = arith.addf %22, %23 : vector<4x32xf32>
    %25 = arith.negf %24 : vector<4x32xf32>
    %26 = math.exp %25 : vector<4x32xf32>
    %cst_24 = arith.constant 1.000000e+00 : f32
    %27 = vector.broadcast %cst_24 : f32 to vector<4x32xf32>
    %28 = arith.addf %27, %26 : vector<4x32xf32>
    %29 = arith.divf %27, %28 : vector<4x32xf32>
    %c2_25 = arith.constant 2 : index
    %c0_26 = arith.constant 0 : index
    %c0_27 = arith.constant 0 : index
    %c0_28 = arith.constant 0 : index
    %30 = vector.load %arg1[%c2_25, %c0_26, %c0_27, %c0_28] : memref<4x8x4x32xf32, #tpu.memory_space<vmem>>, vector<1x1x4x32xf32>
    %31 = vector.shape_cast %30 : vector<1x1x4x32xf32> to vector<4x32xf32>
    %cst_29 = arith.constant dense<0.000000e+00> : vector<4x32xf32>
    %32 = tpu.matmul %10, %5, %cst_29 {dimension_numbers = #tpu.dot_dimension_numbers<[1], [0], [0], [1], [0, 0, 1, 1], [], []>} : vector<4x32xf32>, vector<32x32xf32>, vector<4x32xf32> -> vector<4x32xf32>
    %33 = arith.addf %31, %32 : vector<4x32xf32>
    %34 = math.tanh %33 : vector<4x32xf32>
    %c3_30 = arith.constant 3 : index
    %c0_31 = arith.constant 0 : index
    %c0_32 = arith.constant 0 : index
    %c0_33 = arith.constant 0 : index
    %35 = vector.load %arg1[%c3_30, %c0_31, %c0_32, %c0_33] : memref<4x8x4x32xf32, #tpu.memory_space<vmem>>, vector<1x1x4x32xf32>
    %36 = vector.shape_cast %35 : vector<1x1x4x32xf32> to vector<4x32xf32>
    %cst_34 = arith.constant dense<0.000000e+00> : vector<4x32xf32>
    %37 = tpu.matmul %10, %7, %cst_34 {dimension_numbers = #tpu.dot_dimension_numbers<[1], [0], [0], [1], [0, 0, 1, 1], [], []>} : vector<4x32xf32>, vector<32x32xf32>, vector<4x32xf32> -> vector<4x32xf32>
    %38 = arith.addf %36, %37 : vector<4x32xf32>
    %39 = arith.negf %38 : vector<4x32xf32>
    %40 = math.exp %39 : vector<4x32xf32>
    %cst_35 = arith.constant 1.000000e+00 : f32
    %41 = vector.broadcast %cst_35 : f32 to vector<4x32xf32>
    %42 = arith.addf %41, %40 : vector<4x32xf32>
    %43 = arith.divf %41, %42 : vector<4x32xf32>
    %44 = arith.mulf %29, %11 : vector<4x32xf32>
    %45 = arith.mulf %20, %34 : vector<4x32xf32>
    %46 = arith.addf %44, %45 : vector<4x32xf32>
    %47 = math.tanh %46 : vector<4x32xf32>
    %48 = arith.mulf %43, %47 : vector<4x32xf32>
    %49 = vector.extract_strided_slice %48 {offsets = [3, 0], sizes = [1, 32], strides = [1, 1]} : vector<4x32xf32> to vector<1x32xf32>
    %c0_36 = arith.constant 0 : index
    %c1_37 = arith.constant 1 : index
    %c0_38 = arith.constant 0 : index
    %c0_39 = arith.constant 0 : index
    %50 = vector.load %arg1[%c0_36, %c1_37, %c0_38, %c0_39] : memref<4x8x4x32xf32, #tpu.memory_space<vmem>>, vector<1x1x4x32xf32>
    %51 = vector.shape_cast %50 : vector<1x1x4x32xf32> to vector<4x32xf32>
    %cst_40 = arith.constant dense<0.000000e+00> : vector<4x32xf32>
    %52 = tpu.matmul %48, %1, %cst_40 {dimension_numbers = #tpu.dot_dimension_numbers<[1], [0], [0], [1], [0, 0, 1, 1], [], []>} : vector<4x32xf32>, vector<32x32xf32>, vector<4x32xf32> -> vector<4x32xf32>
    %53 = arith.addf %51, %52 : vector<4x32xf32>
    %54 = arith.negf %53 : vector<4x32xf32>
    %55 = math.exp %54 : vector<4x32xf32>
    %cst_41 = arith.constant 1.000000e+00 : f32
    %56 = vector.broadcast %cst_41 : f32 to vector<4x32xf32>
    %57 = arith.addf %56, %55 : vector<4x32xf32>
    %58 = arith.divf %56, %57 : vector<4x32xf32>
    %c1_42 = arith.constant 1 : index
    %c1_43 = arith.constant 1 : index
    %c0_44 = arith.constant 0 : index
    %c0_45 = arith.constant 0 : index
    %59 = vector.load %arg1[%c1_42, %c1_43, %c0_44, %c0_45] : memref<4x8x4x32xf32, #tpu.memory_space<vmem>>, vector<1x1x4x32xf32>
    %60 = vector.shape_cast %59 : vector<1x1x4x32xf32> to vector<4x32xf32>
    %cst_46 = arith.constant dense<0.000000e+00> : vector<4x32xf32>
    %61 = tpu.matmul %48, %3, %cst_46 {dimension_numbers = #tpu.dot_dimension_numbers<[1], [0], [0], [1], [0, 0, 1, 1], [], []>} : vector<4x32xf32>, vector<32x32xf32>, vector<4x32xf32> -> vector<4x32xf32>
    %62 = arith.addf %60, %61 : vector<4x32xf32>
    %63 = arith.negf %62 : vector<4x32xf32>
    %64 = math.exp %63 : vector<4x32xf32>
    %cst_47 = arith.constant 1.000000e+00 : f32
    %65 = vector.broadcast %cst_47 : f32 to vector<4x32xf32>
    %66 = arith.addf %65, %64 : vector<4x32xf32>
    %67 = arith.divf %65, %66 : vector<4x32xf32>
    %c2_48 = arith.constant 2 : index
    %c1_49 = arith.constant 1 : index
    %c0_50 = arith.constant 0 : index
    %c0_51 = arith.constant 0 : index
    %68 = vector.load %arg1[%c2_48, %c1_49, %c0_50, %c0_51] : memref<4x8x4x32xf32, #tpu.memory_space<vmem>>, vector<1x1x4x32xf32>
    %69 = vector.shape_cast %68 : vector<1x1x4x32xf32> to vector<4x32xf32>
    %cst_52 = arith.constant dense<0.000000e+00> : vector<4x32xf32>
    %70 = tpu.matmul %48, %5, %cst_52 {dimension_numbers = #tpu.dot_dimension_numbers<[1], [0], [0], [1], [0, 0, 1, 1], [], []>} : vector<4x32xf32>, vector<32x32xf32>, vector<4x32xf32> -> vector<4x32xf32>
    %71 = arith.addf %69, %70 : vector<4x32xf32>
    %72 = math.tanh %71 : vector<4x32xf32>
    %c3_53 = arith.constant 3 : index
    %c1_54 = arith.constant 1 : index
    %c0_55 = arith.constant 0 : index
    %c0_56 = arith.constant 0 : index
    %73 = vector.load %arg1[%c3_53, %c1_54, %c0_55, %c0_56] : memref<4x8x4x32xf32, #tpu.memory_space<vmem>>, vector<1x1x4x32xf32>
    %74 = vector.shape_cast %73 : vector<1x1x4x32xf32> to vector<4x32xf32>
    %cst_57 = arith.constant dense<0.000000e+00> : vector<4x32xf32>
    %75 = tpu.matmul %48, %7, %cst_57 {dimension_numbers = #tpu.dot_dimension_numbers<[1], [0], [0], [1], [0, 0, 1, 1], [], []>} : vector<4x32xf32>, vector<32x32xf32>, vector<4x32xf32> -> vector<4x32xf32>
    %76 = arith.addf %74, %75 : vector<4x32xf32>
    %77 = arith.negf %76 : vector<4x32xf32>
    %78 = math.exp %77 : vector<4x32xf32>
    %cst_58 = arith.constant 1.000000e+00 : f32
    %79 = vector.broadcast %cst_58 : f32 to vector<4x32xf32>
    %80 = arith.addf %79, %78 : vector<4x32xf32>
    %81 = arith.divf %79, %80 : vector<4x32xf32>
    %82 = arith.mulf %67, %46 : vector<4x32xf32>
    %83 = arith.mulf %58, %72 : vector<4x32xf32>
    %84 = arith.addf %82, %83 : vector<4x32xf32>
    %85 = math.tanh %84 : vector<4x32xf32>
    %86 = arith.mulf %81, %85 : vector<4x32xf32>
    %87 = vector.extract_strided_slice %86 {offsets = [3, 0], sizes = [1, 32], strides = [1, 1]} : vector<4x32xf32> to vector<1x32xf32>
    %c0_59 = arith.constant 0 : index
    %c2_60 = arith.constant 2 : index
    %c0_61 = arith.constant 0 : index
    %c0_62 = arith.constant 0 : index
    %88 = vector.load %arg1[%c0_59, %c2_60, %c0_61, %c0_62] : memref<4x8x4x32xf32, #tpu.memory_space<vmem>>, vector<1x1x4x32xf32>
    %89 = vector.shape_cast %88 : vector<1x1x4x32xf32> to vector<4x32xf32>
    %cst_63 = arith.constant dense<0.000000e+00> : vector<4x32xf32>
    %90 = tpu.matmul %86, %1, %cst_63 {dimension_numbers = #tpu.dot_dimension_numbers<[1], [0], [0], [1], [0, 0, 1, 1], [], []>} : vector<4x32xf32>, vector<32x32xf32>, vector<4x32xf32> -> vector<4x32xf32>
    %91 = arith.addf %89, %90 : vector<4x32xf32>
    %92 = arith.negf %91 : vector<4x32xf32>
    %93 = math.exp %92 : vector<4x32xf32>
    %cst_64 = arith.constant 1.000000e+00 : f32
    %94 = vector.broadcast %cst_64 : f32 to vector<4x32xf32>
    %95 = arith.addf %94, %93 : vector<4x32xf32>
    %96 = arith.divf %94, %95 : vector<4x32xf32>
    %c1_65 = arith.constant 1 : index
    %c2_66 = arith.constant 2 : index
    %c0_67 = arith.constant 0 : index
    %c0_68 = arith.constant 0 : index
    %97 = vector.load %arg1[%c1_65, %c2_66, %c0_67, %c0_68] : memref<4x8x4x32xf32, #tpu.memory_space<vmem>>, vector<1x1x4x32xf32>
    %98 = vector.shape_cast %97 : vector<1x1x4x32xf32> to vector<4x32xf32>
    %cst_69 = arith.constant dense<0.000000e+00> : vector<4x32xf32>
    %99 = tpu.matmul %86, %3, %cst_69 {dimension_numbers = #tpu.dot_dimension_numbers<[1], [0], [0], [1], [0, 0, 1, 1], [], []>} : vector<4x32xf32>, vector<32x32xf32>, vector<4x32xf32> -> vector<4x32xf32>
    %100 = arith.addf %98, %99 : vector<4x32xf32>
    %101 = arith.negf %100 : vector<4x32xf32>
    %102 = math.exp %101 : vector<4x32xf32>
    %cst_70 = arith.constant 1.000000e+00 : f32
    %103 = vector.broadcast %cst_70 : f32 to vector<4x32xf32>
    %104 = arith.addf %103, %102 : vector<4x32xf32>
    %105 = arith.divf %103, %104 : vector<4x32xf32>
    %c2_71 = arith.constant 2 : index
    %c2_72 = arith.constant 2 : index
    %c0_73 = arith.constant 0 : index
    %c0_74 = arith.constant 0 : index
    %106 = vector.load %arg1[%c2_71, %c2_72, %c0_73, %c0_74] : memref<4x8x4x32xf32, #tpu.memory_space<vmem>>, vector<1x1x4x32xf32>
    %107 = vector.shape_cast %106 : vector<1x1x4x32xf32> to vector<4x32xf32>
    %cst_75 = arith.constant dense<0.000000e+00> : vector<4x32xf32>
    %108 = tpu.matmul %86, %5, %cst_75 {dimension_numbers = #tpu.dot_dimension_numbers<[1], [0], [0], [1], [0, 0, 1, 1], [], []>} : vector<4x32xf32>, vector<32x32xf32>, vector<4x32xf32> -> vector<4x32xf32>
    %109 = arith.addf %107, %108 : vector<4x32xf32>
    %110 = math.tanh %109 : vector<4x32xf32>
    %c3_76 = arith.constant 3 : index
    %c2_77 = arith.constant 2 : index
    %c0_78 = arith.constant 0 : index
    %c0_79 = arith.constant 0 : index
    %111 = vector.load %arg1[%c3_76, %c2_77, %c0_78, %c0_79] : memref<4x8x4x32xf32, #tpu.memory_space<vmem>>, vector<1x1x4x32xf32>
    %112 = vector.shape_cast %111 : vector<1x1x4x32xf32> to vector<4x32xf32>
    %cst_80 = arith.constant dense<0.000000e+00> : vector<4x32xf32>
    %113 = tpu.matmul %86, %7, %cst_80 {dimension_numbers = #tpu.dot_dimension_numbers<[1], [0], [0], [1], [0, 0, 1, 1], [], []>} : vector<4x32xf32>, vector<32x32xf32>, vector<4x32xf32> -> vector<4x32xf32>
    %114 = arith.addf %112, %113 : vector<4x32xf32>
    %115 = arith.negf %114 : vector<4x32xf32>
    %116 = math.exp %115 : vector<4x32xf32>
    %cst_81 = arith.constant 1.000000e+00 : f32
    %117 = vector.broadcast %cst_81 : f32 to vector<4x32xf32>
    %118 = arith.addf %117, %116 : vector<4x32xf32>
    %119 = arith.divf %117, %118 : vector<4x32xf32>
    %120 = arith.mulf %105, %84 : vector<4x32xf32>
    %121 = arith.mulf %96, %110 : vector<4x32xf32>
    %122 = arith.addf %120, %121 : vector<4x32xf32>
    %123 = math.tanh %122 : vector<4x32xf32>
    %124 = arith.mulf %119, %123 : vector<4x32xf32>
    %125 = vector.extract_strided_slice %124 {offsets = [3, 0], sizes = [1, 32], strides = [1, 1]} : vector<4x32xf32> to vector<1x32xf32>
    %c0_82 = arith.constant 0 : index
    %c3_83 = arith.constant 3 : index
    %c0_84 = arith.constant 0 : index
    %c0_85 = arith.constant 0 : index
    %126 = vector.load %arg1[%c0_82, %c3_83, %c0_84, %c0_85] : memref<4x8x4x32xf32, #tpu.memory_space<vmem>>, vector<1x1x4x32xf32>
    %127 = vector.shape_cast %126 : vector<1x1x4x32xf32> to vector<4x32xf32>
    %cst_86 = arith.constant dense<0.000000e+00> : vector<4x32xf32>
    %128 = tpu.matmul %124, %1, %cst_86 {dimension_numbers = #tpu.dot_dimension_numbers<[1], [0], [0], [1], [0, 0, 1, 1], [], []>} : vector<4x32xf32>, vector<32x32xf32>, vector<4x32xf32> -> vector<4x32xf32>
    %129 = arith.addf %127, %128 : vector<4x32xf32>
    %130 = arith.negf %129 : vector<4x32xf32>
    %131 = math.exp %130 : vector<4x32xf32>
    %cst_87 = arith.constant 1.000000e+00 : f32
    %132 = vector.broadcast %cst_87 : f32 to vector<4x32xf32>
    %133 = arith.addf %132, %131 : vector<4x32xf32>
    %134 = arith.divf %132, %133 : vector<4x32xf32>
    %c1_88 = arith.constant 1 : index
    %c3_89 = arith.constant 3 : index
    %c0_90 = arith.constant 0 : index
    %c0_91 = arith.constant 0 : index
    %135 = vector.load %arg1[%c1_88, %c3_89, %c0_90, %c0_91] : memref<4x8x4x32xf32, #tpu.memory_space<vmem>>, vector<1x1x4x32xf32>
    %136 = vector.shape_cast %135 : vector<1x1x4x32xf32> to vector<4x32xf32>
    %cst_92 = arith.constant dense<0.000000e+00> : vector<4x32xf32>
    %137 = tpu.matmul %124, %3, %cst_92 {dimension_numbers = #tpu.dot_dimension_numbers<[1], [0], [0], [1], [0, 0, 1, 1], [], []>} : vector<4x32xf32>, vector<32x32xf32>, vector<4x32xf32> -> vector<4x32xf32>
    %138 = arith.addf %136, %137 : vector<4x32xf32>
    %139 = arith.negf %138 : vector<4x32xf32>
    %140 = math.exp %139 : vector<4x32xf32>
    %cst_93 = arith.constant 1.000000e+00 : f32
    %141 = vector.broadcast %cst_93 : f32 to vector<4x32xf32>
    %142 = arith.addf %141, %140 : vector<4x32xf32>
    %143 = arith.divf %141, %142 : vector<4x32xf32>
    %c2_94 = arith.constant 2 : index
    %c3_95 = arith.constant 3 : index
    %c0_96 = arith.constant 0 : index
    %c0_97 = arith.constant 0 : index
    %144 = vector.load %arg1[%c2_94, %c3_95, %c0_96, %c0_97] : memref<4x8x4x32xf32, #tpu.memory_space<vmem>>, vector<1x1x4x32xf32>
    %145 = vector.shape_cast %144 : vector<1x1x4x32xf32> to vector<4x32xf32>
    %cst_98 = arith.constant dense<0.000000e+00> : vector<4x32xf32>
    %146 = tpu.matmul %124, %5, %cst_98 {dimension_numbers = #tpu.dot_dimension_numbers<[1], [0], [0], [1], [0, 0, 1, 1], [], []>} : vector<4x32xf32>, vector<32x32xf32>, vector<4x32xf32> -> vector<4x32xf32>
    %147 = arith.addf %145, %146 : vector<4x32xf32>
    %148 = math.tanh %147 : vector<4x32xf32>
    %c3_99 = arith.constant 3 : index
    %c3_100 = arith.constant 3 : index
    %c0_101 = arith.constant 0 : index
    %c0_102 = arith.constant 0 : index
    %149 = vector.load %arg1[%c3_99, %c3_100, %c0_101, %c0_102] : memref<4x8x4x32xf32, #tpu.memory_space<vmem>>, vector<1x1x4x32xf32>
    %150 = vector.shape_cast %149 : vector<1x1x4x32xf32> to vector<4x32xf32>
    %cst_103 = arith.constant dense<0.000000e+00> : vector<4x32xf32>
    %151 = tpu.matmul %124, %7, %cst_103 {dimension_numbers = #tpu.dot_dimension_numbers<[1], [0], [0], [1], [0, 0, 1, 1], [], []>} : vector<4x32xf32>, vector<32x32xf32>, vector<4x32xf32> -> vector<4x32xf32>
    %152 = arith.addf %150, %151 : vector<4x32xf32>
    %153 = arith.negf %152 : vector<4x32xf32>
    %154 = math.exp %153 : vector<4x32xf32>
    %cst_104 = arith.constant 1.000000e+00 : f32
    %155 = vector.broadcast %cst_104 : f32 to vector<4x32xf32>
    %156 = arith.addf %155, %154 : vector<4x32xf32>
    %157 = arith.divf %155, %156 : vector<4x32xf32>
    %158 = arith.mulf %143, %122 : vector<4x32xf32>
    %159 = arith.mulf %134, %148 : vector<4x32xf32>
    %160 = arith.addf %158, %159 : vector<4x32xf32>
    %161 = math.tanh %160 : vector<4x32xf32>
    %162 = arith.mulf %157, %161 : vector<4x32xf32>
    %163 = vector.extract_strided_slice %162 {offsets = [3, 0], sizes = [1, 32], strides = [1, 1]} : vector<4x32xf32> to vector<1x32xf32>
    %c0_105 = arith.constant 0 : index
    %c4 = arith.constant 4 : index
    %c0_106 = arith.constant 0 : index
    %c0_107 = arith.constant 0 : index
    %164 = vector.load %arg1[%c0_105, %c4, %c0_106, %c0_107] : memref<4x8x4x32xf32, #tpu.memory_space<vmem>>, vector<1x1x4x32xf32>
    %165 = vector.shape_cast %164 : vector<1x1x4x32xf32> to vector<4x32xf32>
    %cst_108 = arith.constant dense<0.000000e+00> : vector<4x32xf32>
    %166 = tpu.matmul %162, %1, %cst_108 {dimension_numbers = #tpu.dot_dimension_numbers<[1], [0], [0], [1], [0, 0, 1, 1], [], []>} : vector<4x32xf32>, vector<32x32xf32>, vector<4x32xf32> -> vector<4x32xf32>
    %167 = arith.addf %165, %166 : vector<4x32xf32>
    %168 = arith.negf %167 : vector<4x32xf32>
    %169 = math.exp %168 : vector<4x32xf32>
    %cst_109 = arith.constant 1.000000e+00 : f32
    %170 = vector.broadcast %cst_109 : f32 to vector<4x32xf32>
    %171 = arith.addf %170, %169 : vector<4x32xf32>
    %172 = arith.divf %170, %171 : vector<4x32xf32>
    %c1_110 = arith.constant 1 : index
    %c4_111 = arith.constant 4 : index
    %c0_112 = arith.constant 0 : index
    %c0_113 = arith.constant 0 : index
    %173 = vector.load %arg1[%c1_110, %c4_111, %c0_112, %c0_113] : memref<4x8x4x32xf32, #tpu.memory_space<vmem>>, vector<1x1x4x32xf32>
    %174 = vector.shape_cast %173 : vector<1x1x4x32xf32> to vector<4x32xf32>
    %cst_114 = arith.constant dense<0.000000e+00> : vector<4x32xf32>
    %175 = tpu.matmul %162, %3, %cst_114 {dimension_numbers = #tpu.dot_dimension_numbers<[1], [0], [0], [1], [0, 0, 1, 1], [], []>} : vector<4x32xf32>, vector<32x32xf32>, vector<4x32xf32> -> vector<4x32xf32>
    %176 = arith.addf %174, %175 : vector<4x32xf32>
    %177 = arith.negf %176 : vector<4x32xf32>
    %178 = math.exp %177 : vector<4x32xf32>
    %cst_115 = arith.constant 1.000000e+00 : f32
    %179 = vector.broadcast %cst_115 : f32 to vector<4x32xf32>
    %180 = arith.addf %179, %178 : vector<4x32xf32>
    %181 = arith.divf %179, %180 : vector<4x32xf32>
    %c2_116 = arith.constant 2 : index
    %c4_117 = arith.constant 4 : index
    %c0_118 = arith.constant 0 : index
    %c0_119 = arith.constant 0 : index
    %182 = vector.load %arg1[%c2_116, %c4_117, %c0_118, %c0_119] : memref<4x8x4x32xf32, #tpu.memory_space<vmem>>, vector<1x1x4x32xf32>
    %183 = vector.shape_cast %182 : vector<1x1x4x32xf32> to vector<4x32xf32>
    %cst_120 = arith.constant dense<0.000000e+00> : vector<4x32xf32>
    %184 = tpu.matmul %162, %5, %cst_120 {dimension_numbers = #tpu.dot_dimension_numbers<[1], [0], [0], [1], [0, 0, 1, 1], [], []>} : vector<4x32xf32>, vector<32x32xf32>, vector<4x32xf32> -> vector<4x32xf32>
    %185 = arith.addf %183, %184 : vector<4x32xf32>
    %186 = math.tanh %185 : vector<4x32xf32>
    %c3_121 = arith.constant 3 : index
    %c4_122 = arith.constant 4 : index
    %c0_123 = arith.constant 0 : index
    %c0_124 = arith.constant 0 : index
    %187 = vector.load %arg1[%c3_121, %c4_122, %c0_123, %c0_124] : memref<4x8x4x32xf32, #tpu.memory_space<vmem>>, vector<1x1x4x32xf32>
    %188 = vector.shape_cast %187 : vector<1x1x4x32xf32> to vector<4x32xf32>
    %cst_125 = arith.constant dense<0.000000e+00> : vector<4x32xf32>
    %189 = tpu.matmul %162, %7, %cst_125 {dimension_numbers = #tpu.dot_dimension_numbers<[1], [0], [0], [1], [0, 0, 1, 1], [], []>} : vector<4x32xf32>, vector<32x32xf32>, vector<4x32xf32> -> vector<4x32xf32>
    %190 = arith.addf %188, %189 : vector<4x32xf32>
    %191 = arith.negf %190 : vector<4x32xf32>
    %192 = math.exp %191 : vector<4x32xf32>
    %cst_126 = arith.constant 1.000000e+00 : f32
    %193 = vector.broadcast %cst_126 : f32 to vector<4x32xf32>
    %194 = arith.addf %193, %192 : vector<4x32xf32>
    %195 = arith.divf %193, %194 : vector<4x32xf32>
    %196 = arith.mulf %181, %160 : vector<4x32xf32>
    %197 = arith.mulf %172, %186 : vector<4x32xf32>
    %198 = arith.addf %196, %197 : vector<4x32xf32>
    %199 = math.tanh %198 : vector<4x32xf32>
    %200 = arith.mulf %195, %199 : vector<4x32xf32>
    %201 = vector.extract_strided_slice %200 {offsets = [3, 0], sizes = [1, 32], strides = [1, 1]} : vector<4x32xf32> to vector<1x32xf32>
    %c0_127 = arith.constant 0 : index
    %c5 = arith.constant 5 : index
    %c0_128 = arith.constant 0 : index
    %c0_129 = arith.constant 0 : index
    %202 = vector.load %arg1[%c0_127, %c5, %c0_128, %c0_129] : memref<4x8x4x32xf32, #tpu.memory_space<vmem>>, vector<1x1x4x32xf32>
    %203 = vector.shape_cast %202 : vector<1x1x4x32xf32> to vector<4x32xf32>
    %cst_130 = arith.constant dense<0.000000e+00> : vector<4x32xf32>
    %204 = tpu.matmul %200, %1, %cst_130 {dimension_numbers = #tpu.dot_dimension_numbers<[1], [0], [0], [1], [0, 0, 1, 1], [], []>} : vector<4x32xf32>, vector<32x32xf32>, vector<4x32xf32> -> vector<4x32xf32>
    %205 = arith.addf %203, %204 : vector<4x32xf32>
    %206 = arith.negf %205 : vector<4x32xf32>
    %207 = math.exp %206 : vector<4x32xf32>
    %cst_131 = arith.constant 1.000000e+00 : f32
    %208 = vector.broadcast %cst_131 : f32 to vector<4x32xf32>
    %209 = arith.addf %208, %207 : vector<4x32xf32>
    %210 = arith.divf %208, %209 : vector<4x32xf32>
    %c1_132 = arith.constant 1 : index
    %c5_133 = arith.constant 5 : index
    %c0_134 = arith.constant 0 : index
    %c0_135 = arith.constant 0 : index
    %211 = vector.load %arg1[%c1_132, %c5_133, %c0_134, %c0_135] : memref<4x8x4x32xf32, #tpu.memory_space<vmem>>, vector<1x1x4x32xf32>
    %212 = vector.shape_cast %211 : vector<1x1x4x32xf32> to vector<4x32xf32>
    %cst_136 = arith.constant dense<0.000000e+00> : vector<4x32xf32>
    %213 = tpu.matmul %200, %3, %cst_136 {dimension_numbers = #tpu.dot_dimension_numbers<[1], [0], [0], [1], [0, 0, 1, 1], [], []>} : vector<4x32xf32>, vector<32x32xf32>, vector<4x32xf32> -> vector<4x32xf32>
    %214 = arith.addf %212, %213 : vector<4x32xf32>
    %215 = arith.negf %214 : vector<4x32xf32>
    %216 = math.exp %215 : vector<4x32xf32>
    %cst_137 = arith.constant 1.000000e+00 : f32
    %217 = vector.broadcast %cst_137 : f32 to vector<4x32xf32>
    %218 = arith.addf %217, %216 : vector<4x32xf32>
    %219 = arith.divf %217, %218 : vector<4x32xf32>
    %c2_138 = arith.constant 2 : index
    %c5_139 = arith.constant 5 : index
    %c0_140 = arith.constant 0 : index
    %c0_141 = arith.constant 0 : index
    %220 = vector.load %arg1[%c2_138, %c5_139, %c0_140, %c0_141] : memref<4x8x4x32xf32, #tpu.memory_space<vmem>>, vector<1x1x4x32xf32>
    %221 = vector.shape_cast %220 : vector<1x1x4x32xf32> to vector<4x32xf32>
    %cst_142 = arith.constant dense<0.000000e+00> : vector<4x32xf32>
    %222 = tpu.matmul %200, %5, %cst_142 {dimension_numbers = #tpu.dot_dimension_numbers<[1], [0], [0], [1], [0, 0, 1, 1], [], []>} : vector<4x32xf32>, vector<32x32xf32>, vector<4x32xf32> -> vector<4x32xf32>
    %223 = arith.addf %221, %222 : vector<4x32xf32>
    %224 = math.tanh %223 : vector<4x32xf32>
    %c3_143 = arith.constant 3 : index
    %c5_144 = arith.constant 5 : index
    %c0_145 = arith.constant 0 : index
    %c0_146 = arith.constant 0 : index
    %225 = vector.load %arg1[%c3_143, %c5_144, %c0_145, %c0_146] : memref<4x8x4x32xf32, #tpu.memory_space<vmem>>, vector<1x1x4x32xf32>
    %226 = vector.shape_cast %225 : vector<1x1x4x32xf32> to vector<4x32xf32>
    %cst_147 = arith.constant dense<0.000000e+00> : vector<4x32xf32>
    %227 = tpu.matmul %200, %7, %cst_147 {dimension_numbers = #tpu.dot_dimension_numbers<[1], [0], [0], [1], [0, 0, 1, 1], [], []>} : vector<4x32xf32>, vector<32x32xf32>, vector<4x32xf32> -> vector<4x32xf32>
    %228 = arith.addf %226, %227 : vector<4x32xf32>
    %229 = arith.negf %228 : vector<4x32xf32>
    %230 = math.exp %229 : vector<4x32xf32>
    %cst_148 = arith.constant 1.000000e+00 : f32
    %231 = vector.broadcast %cst_148 : f32 to vector<4x32xf32>
    %232 = arith.addf %231, %230 : vector<4x32xf32>
    %233 = arith.divf %231, %232 : vector<4x32xf32>
    %234 = arith.mulf %219, %198 : vector<4x32xf32>
    %235 = arith.mulf %210, %224 : vector<4x32xf32>
    %236 = arith.addf %234, %235 : vector<4x32xf32>
    %237 = math.tanh %236 : vector<4x32xf32>
    %238 = arith.mulf %233, %237 : vector<4x32xf32>
    %239 = vector.extract_strided_slice %238 {offsets = [3, 0], sizes = [1, 32], strides = [1, 1]} : vector<4x32xf32> to vector<1x32xf32>
    %c0_149 = arith.constant 0 : index
    %c6 = arith.constant 6 : index
    %c0_150 = arith.constant 0 : index
    %c0_151 = arith.constant 0 : index
    %240 = vector.load %arg1[%c0_149, %c6, %c0_150, %c0_151] : memref<4x8x4x32xf32, #tpu.memory_space<vmem>>, vector<1x1x4x32xf32>
    %241 = vector.shape_cast %240 : vector<1x1x4x32xf32> to vector<4x32xf32>
    %cst_152 = arith.constant dense<0.000000e+00> : vector<4x32xf32>
    %242 = tpu.matmul %238, %1, %cst_152 {dimension_numbers = #tpu.dot_dimension_numbers<[1], [0], [0], [1], [0, 0, 1, 1], [], []>} : vector<4x32xf32>, vector<32x32xf32>, vector<4x32xf32> -> vector<4x32xf32>
    %243 = arith.addf %241, %242 : vector<4x32xf32>
    %244 = arith.negf %243 : vector<4x32xf32>
    %245 = math.exp %244 : vector<4x32xf32>
    %cst_153 = arith.constant 1.000000e+00 : f32
    %246 = vector.broadcast %cst_153 : f32 to vector<4x32xf32>
    %247 = arith.addf %246, %245 : vector<4x32xf32>
    %248 = arith.divf %246, %247 : vector<4x32xf32>
    %c1_154 = arith.constant 1 : index
    %c6_155 = arith.constant 6 : index
    %c0_156 = arith.constant 0 : index
    %c0_157 = arith.constant 0 : index
    %249 = vector.load %arg1[%c1_154, %c6_155, %c0_156, %c0_157] : memref<4x8x4x32xf32, #tpu.memory_space<vmem>>, vector<1x1x4x32xf32>
    %250 = vector.shape_cast %249 : vector<1x1x4x32xf32> to vector<4x32xf32>
    %cst_158 = arith.constant dense<0.000000e+00> : vector<4x32xf32>
    %251 = tpu.matmul %238, %3, %cst_158 {dimension_numbers = #tpu.dot_dimension_numbers<[1], [0], [0], [1], [0, 0, 1, 1], [], []>} : vector<4x32xf32>, vector<32x32xf32>, vector<4x32xf32> -> vector<4x32xf32>
    %252 = arith.addf %250, %251 : vector<4x32xf32>
    %253 = arith.negf %252 : vector<4x32xf32>
    %254 = math.exp %253 : vector<4x32xf32>
    %cst_159 = arith.constant 1.000000e+00 : f32
    %255 = vector.broadcast %cst_159 : f32 to vector<4x32xf32>
    %256 = arith.addf %255, %254 : vector<4x32xf32>
    %257 = arith.divf %255, %256 : vector<4x32xf32>
    %c2_160 = arith.constant 2 : index
    %c6_161 = arith.constant 6 : index
    %c0_162 = arith.constant 0 : index
    %c0_163 = arith.constant 0 : index
    %258 = vector.load %arg1[%c2_160, %c6_161, %c0_162, %c0_163] : memref<4x8x4x32xf32, #tpu.memory_space<vmem>>, vector<1x1x4x32xf32>
    %259 = vector.shape_cast %258 : vector<1x1x4x32xf32> to vector<4x32xf32>
    %cst_164 = arith.constant dense<0.000000e+00> : vector<4x32xf32>
    %260 = tpu.matmul %238, %5, %cst_164 {dimension_numbers = #tpu.dot_dimension_numbers<[1], [0], [0], [1], [0, 0, 1, 1], [], []>} : vector<4x32xf32>, vector<32x32xf32>, vector<4x32xf32> -> vector<4x32xf32>
    %261 = arith.addf %259, %260 : vector<4x32xf32>
    %262 = math.tanh %261 : vector<4x32xf32>
    %c3_165 = arith.constant 3 : index
    %c6_166 = arith.constant 6 : index
    %c0_167 = arith.constant 0 : index
    %c0_168 = arith.constant 0 : index
    %263 = vector.load %arg1[%c3_165, %c6_166, %c0_167, %c0_168] : memref<4x8x4x32xf32, #tpu.memory_space<vmem>>, vector<1x1x4x32xf32>
    %264 = vector.shape_cast %263 : vector<1x1x4x32xf32> to vector<4x32xf32>
    %cst_169 = arith.constant dense<0.000000e+00> : vector<4x32xf32>
    %265 = tpu.matmul %238, %7, %cst_169 {dimension_numbers = #tpu.dot_dimension_numbers<[1], [0], [0], [1], [0, 0, 1, 1], [], []>} : vector<4x32xf32>, vector<32x32xf32>, vector<4x32xf32> -> vector<4x32xf32>
    %266 = arith.addf %264, %265 : vector<4x32xf32>
    %267 = arith.negf %266 : vector<4x32xf32>
    %268 = math.exp %267 : vector<4x32xf32>
    %cst_170 = arith.constant 1.000000e+00 : f32
    %269 = vector.broadcast %cst_170 : f32 to vector<4x32xf32>
    %270 = arith.addf %269, %268 : vector<4x32xf32>
    %271 = arith.divf %269, %270 : vector<4x32xf32>
    %272 = arith.mulf %257, %236 : vector<4x32xf32>
    %273 = arith.mulf %248, %262 : vector<4x32xf32>
    %274 = arith.addf %272, %273 : vector<4x32xf32>
    %275 = math.tanh %274 : vector<4x32xf32>
    %276 = arith.mulf %271, %275 : vector<4x32xf32>
    %277 = vector.extract_strided_slice %276 {offsets = [3, 0], sizes = [1, 32], strides = [1, 1]} : vector<4x32xf32> to vector<1x32xf32>
    %c0_171 = arith.constant 0 : index
    %c7 = arith.constant 7 : index
    %c0_172 = arith.constant 0 : index
    %c0_173 = arith.constant 0 : index
    %278 = vector.load %arg1[%c0_171, %c7, %c0_172, %c0_173] : memref<4x8x4x32xf32, #tpu.memory_space<vmem>>, vector<1x1x4x32xf32>
    %279 = vector.shape_cast %278 : vector<1x1x4x32xf32> to vector<4x32xf32>
    %cst_174 = arith.constant dense<0.000000e+00> : vector<4x32xf32>
    %280 = tpu.matmul %276, %1, %cst_174 {dimension_numbers = #tpu.dot_dimension_numbers<[1], [0], [0], [1], [0, 0, 1, 1], [], []>} : vector<4x32xf32>, vector<32x32xf32>, vector<4x32xf32> -> vector<4x32xf32>
    %281 = arith.addf %279, %280 : vector<4x32xf32>
    %282 = arith.negf %281 : vector<4x32xf32>
    %283 = math.exp %282 : vector<4x32xf32>
    %cst_175 = arith.constant 1.000000e+00 : f32
    %284 = vector.broadcast %cst_175 : f32 to vector<4x32xf32>
    %285 = arith.addf %284, %283 : vector<4x32xf32>
    %286 = arith.divf %284, %285 : vector<4x32xf32>
    %c1_176 = arith.constant 1 : index
    %c7_177 = arith.constant 7 : index
    %c0_178 = arith.constant 0 : index
    %c0_179 = arith.constant 0 : index
    %287 = vector.load %arg1[%c1_176, %c7_177, %c0_178, %c0_179] : memref<4x8x4x32xf32, #tpu.memory_space<vmem>>, vector<1x1x4x32xf32>
    %288 = vector.shape_cast %287 : vector<1x1x4x32xf32> to vector<4x32xf32>
    %cst_180 = arith.constant dense<0.000000e+00> : vector<4x32xf32>
    %289 = tpu.matmul %276, %3, %cst_180 {dimension_numbers = #tpu.dot_dimension_numbers<[1], [0], [0], [1], [0, 0, 1, 1], [], []>} : vector<4x32xf32>, vector<32x32xf32>, vector<4x32xf32> -> vector<4x32xf32>
    %290 = arith.addf %288, %289 : vector<4x32xf32>
    %291 = arith.negf %290 : vector<4x32xf32>
    %292 = math.exp %291 : vector<4x32xf32>
    %cst_181 = arith.constant 1.000000e+00 : f32
    %293 = vector.broadcast %cst_181 : f32 to vector<4x32xf32>
    %294 = arith.addf %293, %292 : vector<4x32xf32>
    %295 = arith.divf %293, %294 : vector<4x32xf32>
    %c2_182 = arith.constant 2 : index
    %c7_183 = arith.constant 7 : index
    %c0_184 = arith.constant 0 : index
    %c0_185 = arith.constant 0 : index
    %296 = vector.load %arg1[%c2_182, %c7_183, %c0_184, %c0_185] : memref<4x8x4x32xf32, #tpu.memory_space<vmem>>, vector<1x1x4x32xf32>
    %297 = vector.shape_cast %296 : vector<1x1x4x32xf32> to vector<4x32xf32>
    %cst_186 = arith.constant dense<0.000000e+00> : vector<4x32xf32>
    %298 = tpu.matmul %276, %5, %cst_186 {dimension_numbers = #tpu.dot_dimension_numbers<[1], [0], [0], [1], [0, 0, 1, 1], [], []>} : vector<4x32xf32>, vector<32x32xf32>, vector<4x32xf32> -> vector<4x32xf32>
    %299 = arith.addf %297, %298 : vector<4x32xf32>
    %300 = math.tanh %299 : vector<4x32xf32>
    %c3_187 = arith.constant 3 : index
    %c7_188 = arith.constant 7 : index
    %c0_189 = arith.constant 0 : index
    %c0_190 = arith.constant 0 : index
    %301 = vector.load %arg1[%c3_187, %c7_188, %c0_189, %c0_190] : memref<4x8x4x32xf32, #tpu.memory_space<vmem>>, vector<1x1x4x32xf32>
    %302 = vector.shape_cast %301 : vector<1x1x4x32xf32> to vector<4x32xf32>
    %cst_191 = arith.constant dense<0.000000e+00> : vector<4x32xf32>
    %303 = tpu.matmul %276, %7, %cst_191 {dimension_numbers = #tpu.dot_dimension_numbers<[1], [0], [0], [1], [0, 0, 1, 1], [], []>} : vector<4x32xf32>, vector<32x32xf32>, vector<4x32xf32> -> vector<4x32xf32>
    %304 = arith.addf %302, %303 : vector<4x32xf32>
    %305 = arith.negf %304 : vector<4x32xf32>
    %306 = math.exp %305 : vector<4x32xf32>
    %cst_192 = arith.constant 1.000000e+00 : f32
    %307 = vector.broadcast %cst_192 : f32 to vector<4x32xf32>
    %308 = arith.addf %307, %306 : vector<4x32xf32>
    %309 = arith.divf %307, %308 : vector<4x32xf32>
    %310 = arith.mulf %295, %274 : vector<4x32xf32>
    %311 = arith.mulf %286, %300 : vector<4x32xf32>
    %312 = arith.addf %310, %311 : vector<4x32xf32>
    %313 = math.tanh %312 : vector<4x32xf32>
    %314 = arith.mulf %309, %313 : vector<4x32xf32>
    %315 = vector.extract_strided_slice %314 {offsets = [3, 0], sizes = [1, 32], strides = [1, 1]} : vector<4x32xf32> to vector<1x32xf32>
    %316 = tpu.concatenate %49, %87, %125, %163, %201, %239, %277, %315 in 0 : vector<1x32xf32>, vector<1x32xf32>, vector<1x32xf32>, vector<1x32xf32>, vector<1x32xf32>, vector<1x32xf32>, vector<1x32xf32>, vector<1x32xf32> -> vector<8x32xf32>
    %cst_193 = arith.constant dense<0.000000e+00> : vector<8x128xf32>
    %317 = tpu.matmul %316, %8, %cst_193 {dimension_numbers = #tpu.dot_dimension_numbers<[1], [0], [0], [1], [0, 0, 1, 1], [], []>} : vector<8x32xf32>, vector<32x128xf32>, vector<8x128xf32> -> vector<8x128xf32>
    %318 = vector.broadcast %9 : vector<1x128xf32> to vector<8x128xf32>
    %319 = arith.addf %317, %318 : vector<8x128xf32>
    %c0_194 = arith.constant 0 : index
    %c0_195 = arith.constant 0 : index
    %320 = vector.load %arg5[%c0_194, %c0_195] : memref<8x128xf32, #tpu.memory_space<vmem>>, vector<8x128xf32>
    tpu.vector_store %arg5[%c0_194, %c0_195], %319 {strides = array<i32>} : memref<8x128xf32, #tpu.memory_space<vmem>>, vector<8x128xf32>,
    return
  }
  func.func @transform_0(%arg0: i32) -> (i32, i32, i32, i32) {
    %c0_i32 = arith.constant 0 : i32
    %c0_i32_0 = arith.constant 0 : i32
    %c0_i32_1 = arith.constant 0 : i32
    %c0_i32_2 = arith.constant 0 : i32
    %c0_i32_3 = arith.constant 0 : i32
    return %c0_i32, %c0_i32_0, %c0_i32_1, %c0_i32_2 : i32, i32, i32, i32
  }
  func.func @transform_1(%arg0: i32) -> (i32, i32, i32) {
    %c0_i32 = arith.constant 0 : i32
    %c0_i32_0 = arith.constant 0 : i32
    %c0_i32_1 = arith.constant 0 : i32
    %c0_i32_2 = arith.constant 0 : i32
    return %c0_i32, %c0_i32_0, %c0_i32_1 : i32, i32, i32
  }
  func.func @transform_2(%arg0: i32) -> (i32, i32) {
    %c0_i32 = arith.constant 0 : i32
    %c0_i32_0 = arith.constant 0 : i32
    %c0_i32_1 = arith.constant 0 : i32
    return %c0_i32, %c0_i32_0 : i32, i32
  }
  func.func @transform_3(%arg0: i32) -> (i32, i32) {
    %c0_i32 = arith.constant 0 : i32
    %c0_i32_0 = arith.constant 0 : i32
    %c0_i32_1 = arith.constant 0 : i32
    return %c0_i32, %c0_i32_0 : i32, i32
  }
  func.func @transform_4(%arg0: i32) -> (i32, i32) {
    %c0_i32 = arith.constant 0 : i32
    %c0_i32_0 = arith.constant 0 : i32
    %c0_i32_1 = arith.constant 0 : i32
    return %c0_i32, %c0_i32_0 : i32, i32
  }
}

</mosaic_0001>

<bundles_post_ra>
// kernel: _lstm_forward.1
= control target key start
LH: loop header
LB: loop body
LE: loop exit
PB: predicated region body
PF: predicated region fallthrough
CT: control target
= control target key end

     0   :  { %v3477_v0 = vmov 0.0   ;;  %vm3478_vm0 = vmmov 0   ;;  %vm42_vm1 = vcmask 261120   ;;  %vm2608_vm2 = vcmask 1040384   ;;  %s4166_s1 = inlined_call_operand.vmem [shape: f32[4,32,32], index: 1, kind: input, shape index: {}]   ;;  %s4167_s0 = inlined_call_operand.vmem [shape: f32[4,8,4,32], index: 0, kind: input, shape index: {}]   ;;  %s4168_s2 = inlined_call_operand.vmem [shape: f32[32,128], index: 2, kind: input, shape index: {}]   ;;  %s4169_s3 = inlined_call_operand.vmem [shape: f32[1,128], index: 3, kind: input, shape index: {}]   ;;  %s4170_s4 = inlined_call_operand.vmem [shape: f32[8,128], index: 4, kind: output, shape index: {}]  }
   0x1   :  { %2968 = vmatprep.subr.mxu0 %v3477_v0  ;;  %2979 = vmatprep.subr.mxu1 %v3477_v0  ;;  %v3509_v1 = vld [vmem:[%s4166_s1 + $0x18] sm:$0xff]  ;;  %v3519_v3 = vld [vmem:[%s4166_s1 + $0x10] sm:$0xff]  ;;  %v3533_v5 = vld [vmem:[%s4166_s1 + $0x8] sm:$0xff]  ;;  %vm2610_vm3 = vcmask 1041408   ;;  %vm2612_vm4 = vcmask 1042432   ;;  %vm2614_vm5 = vcmask 1043456  }
   0x2   :  { %v3514_v2 = vld [vmem:[%s4166_s1 + $0x38] sm:$0xff]  ;;  %2969 = vmatpush3.msra.mxu0 %v3509_v1  ;;  %v3526_v4 = vld [vmem:[%s4166_s1 + $0x30] sm:$0xff]  ;;  %v3538_v6 = vld [vmem:[%s4166_s1 + $0x28] sm:$0xff]  ;;  %2976 = vmatprep.mubr.msk.f32.mxu0 %vm3478_vm0, %v3477_v0  ;;  %vm2616_vm6 = vcmask 1044480   ;;  %vm2618_vm7 = vcmask 1045504   ;;  %vm2620_vm8 = vcmask 1046528  }
   0x3   :  { %2980 = vmatpush3.msra.mxu1 %v3514_v2  ;;  %2970 = vmatprep.subr.mxu0 %v3477_v0  ;;  %v3547_v7 = vld [vmem:[%s4166_s1] sm:$0xff]  ;;  %v3567_v9 = vld [vmem:[%s4166_s1 + $0x58] sm:$0xff]  ;;  %v3581_v11 = vld [vmem:[%s4166_s1 + $0x50] sm:$0xff] }
   0x4   :  { %2981 = vmatprep.subr.mxu1 %v3477_v0  ;;  %2971 = vmatpush3.msra.mxu0 %v3519_v3  ;;  %v3554_v8 = vld [vmem:[%s4166_s1 + $0x20] sm:$0xff]  ;;  %v3572_v10 = vld [vmem:[%s4166_s1 + $0x78] sm:$0xff]  ;;  %v3586_v12 = vld [vmem:[%s4166_s1 + $0x70] sm:$0xff] }
   0x5   :  { %2982 = vmatpush3.msra.mxu1 %v3526_v4  ;;  %2972 = vmatprep.subr.mxu0 %v3477_v0  ;;  %v3595_v13 = vld [vmem:[%s4166_s1 + $0x48] sm:$0xff]  ;;  %v3609_v15 = vld [vmem:[%s4166_s1 + $0x40] sm:$0xff] }
   0x6   :  { %2983 = vmatprep.subr.mxu1 %v3477_v0  ;;  %2973 = vmatpush3.msra.mxu0 %v3533_v5  ;;  %v3600_v14 = vld [vmem:[%s4166_s1 + $0x68] sm:$0xff]  ;;  %v3616_v16 = vld [vmem:[%s4166_s1 + $0x60] sm:$0xff] }
   0x7   :  { %2984 = vmatpush3.msra.mxu1 %v3538_v6  ;;  %2974 = vmatprep.subr.mxu0 %v3477_v0  ;;  %v41_v17 = vld [vmem:[%s4167_s0] sm:$0xf]  ;;  %v2724_v51 = vld [vmem:[%s4167_s0 + $0x4] sm:$0xf] }
   0x8   :  { %2985 = vmatprep.subr.mxu1 %v3477_v0  ;;  %2975 = vmatpush3.msra.mxu0 %v3547_v7  ;;  %v2719_v18 = vld [vmem:[%s4167_s0 + $0x20] sm:$0xf]  ;;  %v2727_v52 = vld [vmem:[%s4167_s0 + $0x24] sm:$0xf] }
   0x9   :  { %2986 = vmatpush3.msra.mxu1 %v3554_v8  ;;  %2987 = vmatprep.mubr.msk.f32.mxu1 %vm3478_vm0, %v3477_v0  ;;  %v2722_v27 = vld [vmem:[%s4167_s0 + $0x60] sm:$0xf]  ;;  %v2732_v61 = vld [vmem:[%s4167_s0 + $0x64] sm:$0xf] }
   0xa   :  { %2977 = vmatmul.mubr.f32.vlgmr.msra.gmra.mxu0 %v3477_v0  ;;  %2988 = vmatmul.mubr.f32.vlgmr.msra.gmra.mxu1 %v3477_v0  ;;  %v2721_v31 = vld [vmem:[%s4167_s0 + $0x40] sm:$0xf] }
   0xb   :  { %2990 = vmatprep.subr.mxu0 %v3477_v0  ;;  %3001 = vmatprep.subr.mxu1 %v3477_v0 }
   0xc   :  { %2991 = vmatpush3.msra.mxu0 %v3567_v9  ;;  %3002 = vmatpush3.msra.mxu1 %v3572_v10 }
   0xd   :  { %2992 = vmatprep.subr.mxu0 %v3477_v0  ;;  %3003 = vmatprep.subr.mxu1 %v3477_v0 }
   0xe   :  { %2993 = vmatpush3.msra.mxu0 %v3581_v11  ;;  %3004 = vmatpush3.msra.mxu1 %v3586_v12 }
   0xf   :  { %2994 = vmatprep.subr.mxu0 %v3477_v0  ;;  %3005 = vmatprep.subr.mxu1 %v3477_v0 }
  0x10   :  { %2995 = vmatpush3.msra.mxu0 %v3595_v13  ;;  %3006 = vmatpush3.msra.mxu1 %v3600_v14 }
  0x11   :  { %2996 = vmatprep.subr.mxu0 %v3477_v0  ;;  %3007 = vmatprep.subr.mxu1 %v3477_v0 }
  0x12   :  { %2997 = vmatpush3.msra.mxu0 %v3609_v15  ;;  %2998 = vmatprep.mubr.msk.f32.mxu0 %vm3478_vm0, %v3477_v0 }
  0x13   :  { %3008 = vmatpush3.msra.mxu1 %v3616_v16  ;;  %3009 = vmatprep.mubr.msk.f32.mxu1 %vm3478_vm0, %v3477_v0 }
  0x14   :  { %2999 = vmatmul.mubr.f32.vlgmr.msra.gmra.mxu0 %v3477_v0  ;;  %3010 = vmatmul.mubr.f32.vlgmr.msra.gmra.mxu1 %v3477_v0 }
  0x15   :  { %3012 = vmatprep.subr.mxu0 %v3477_v0  ;;  %3023 = vmatprep.subr.mxu1 %v3477_v0 }
  0x16   :  { %3013 = vmatpush3.msra.mxu0 %v3509_v1  ;;  %3024 = vmatpush3.msra.mxu1 %v3514_v2 }
  0x17   :  { %3014 = vmatprep.subr.mxu0 %v3477_v0  ;;  %3025 = vmatprep.subr.mxu1 %v3477_v0 }
  0x18   :  { %3015 = vmatpush3.msra.mxu0 %v3519_v3  ;;  %3026 = vmatpush3.msra.mxu1 %v3526_v4 }
  0x19   :  { %3016 = vmatprep.subr.mxu0 %v3477_v0  ;;  %3027 = vmatprep.subr.mxu1 %v3477_v0 }
  0x1a   :  { %3017 = vmatpush3.msra.mxu0 %v3533_v5  ;;  %3028 = vmatpush3.msra.mxu1 %v3538_v6 }
  0x1b   :  { %3018 = vmatprep.subr.mxu0 %v3477_v0  ;;  %3029 = vmatprep.subr.mxu1 %v3477_v0 }
  0x1c   :  { %3019 = vmatpush3.msra.mxu0 %v3547_v7  ;;  %3030 = vmatpush3.msra.mxu1 %v3554_v8 }
  0x1d   :  { %3020 = vmatprep.mubr.msk.f32.mxu0 %vm3478_vm0, %v3477_v0  ;;  %3031 = vmatprep.mubr.msk.f32.mxu1 %vm3478_vm0, %v3477_v0 }
  0x1e   :  { %3034 = vmatprep.subr.mxu0 %v3477_v0  ;;  %3045 = vmatprep.subr.mxu1 %v3477_v0 }
  0xca   :  { %v112_v19 = vpop.f32.mrf.mxu0  ;;  %v191_v20 = vpop.f32.mrf.mxu1 }
  0xcb   :  { %v116_v21 = vadd.f32 %v112_v19, %v41_v17  ;;  %v195_v22 = vadd.f32 %v2719_v18, %v191_v20  ;;  %v2730_v20 = vld [vmem:[%s4167_s0 + $0x44] sm:$0xf] }
  0xcc   :  { %v2978_v23 = vpop.f32.mrf.mxu0  ;;  %v2989_v24 = vpop.f32.mrf.mxu1 }
  0xcd   :  { %v2718_v25 = vmul.f32 -1.442695, %v116_v21  ;;  %v2720_v26 = vmul.f32 -1.442695, %v195_v22 }
  0xcf   :  { %3333 = vpow2.f32 %v2718_v25 }
  0xd0   :  { %3335 = vpow2.f32 %v2720_v26 }
  0xd4   :  { %v270_v28 = vpop.f32.mrf.mxu0  ;;  %v344_v29 = vpop.f32.mrf.mxu1 }
  0xd5   :  { %v348_v30 = vadd.f32 %v2722_v27, %v344_v29  ;;  %v274_v35 = vadd.f32 %v2721_v31, %v270_v28 }
  0xd6   :  { %v3000_v32 = vpop.f32.mrf.mxu0  ;;  %v3011_v33 = vpop.f32.mrf.mxu1 }
  0xd7   :  { %v2723_v34 = vmul.f32 -1.442695, %v348_v30 }
  0xd9   :  { %3337 = vpow2.f32 %v2723_v34 }
  0xda   :  { %3339 = vtanh.f32 %v274_v35 }
  0xdc   :  { %v3334_v36 = vpop.eup %3333 }
  0xdd   :  { %v3336_v37 = vpop.eup %3335  ;;  %v120_v38 = vadd.f32 1.0, %v3334_v36 }
  0xde   :  { %v199_v39 = vadd.f32 1.0, %v3336_v37 }
  0xdf   :  { %3341 = vrcp.f32 %v120_v38 }
  0xe0   :  { %3343 = vrcp.f32 %v199_v39 }
  0xe6   :  { %v3338_v40 = vpop.eup %3337 }
  0xe7   :  { %v3340_v41 = vpop.eup %3339  ;;  %v352_v43 = vadd.f32 1.0, %v3338_v40 }
  0xe9   :  { %3345 = vrcp.f32 %v352_v43 }
  0xec   :  { %v3342_v42 = vpop.eup %3341 }
  0xed   :  { %v3344_v44 = vpop.eup %3343  ;;  %v356_v45 = vmul.f32 %v3342_v42, %v3340_v41  ;;  %v2735_v41 = vld [vmem:[%s4167_s0 + $0x8] sm:$0xf] }
  0xee   :  { %v355_v46 = vmul.f32 0.0, %v3344_v44  ;;  %v2738_v42 = vld [vmem:[%s4167_s0 + $0x28] sm:$0xf] }
  0xf0   :  { %v3662_v47 = vadd.f32 %v356_v45, %v355_v46 }
  0xf2   :  { %3347 = vtanh.f32 %v3662_v47 }
  0xf6   :  { %v3346_v48 = vpop.eup %3345 }
  0xff   :  { %v3348_v49 = vpop.eup %3347 }
 0x100   :  { %v3665_v50 = vmul.f32 %v3348_v49, %v3346_v48 }
 0x102   :  { %3021 = vmatmul.mubr.msk.f32.vlgmr.msra.gmra.mxu0 %vm42_vm1, %v3665_v50  ;;  %3032 = vmatmul.mubr.msk.f32.vlgmr.msra.gmra.mxu1 %vm42_vm1, %v3665_v50  ;;  %v2593_v38 = vrot.slane %v3665_v50, 3 }
 0x103   :  { %3035 = vmatpush3.msra.mxu0 %v3567_v9  ;;  %3046 = vmatpush3.msra.mxu1 %v3572_v10 }
 0x104   :  { %3036 = vmatprep.subr.mxu0 %v3477_v0  ;;  %3047 = vmatprep.subr.mxu1 %v3477_v0 }
 0x105   :  { %3037 = vmatpush3.msra.mxu0 %v3581_v11  ;;  %3048 = vmatpush3.msra.mxu1 %v3586_v12 }
 0x106   :  { %3038 = vmatprep.subr.mxu0 %v3477_v0  ;;  %3049 = vmatprep.subr.mxu1 %v3477_v0 }
 0x107   :  { %3039 = vmatpush3.msra.mxu0 %v3595_v13  ;;  %3050 = vmatpush3.msra.mxu1 %v3600_v14 }
 0x108   :  { %3040 = vmatprep.subr.mxu0 %v3477_v0  ;;  %3051 = vmatprep.subr.mxu1 %v3477_v0 }
 0x109   :  { %3041 = vmatpush3.msra.mxu0 %v3609_v15  ;;  %3042 = vmatprep.mubr.msk.f32.mxu0 %vm3478_vm0, %v3477_v0 }
 0x10a   :  { %3052 = vmatpush3.msra.mxu1 %v3616_v16  ;;  %3053 = vmatprep.mubr.msk.f32.mxu1 %vm3478_vm0, %v3477_v0 }
 0x10b   :  { %3043 = vmatmul.mubr.msk.f32.vlgmr.msra.gmra.mxu0 %vm42_vm1, %v3665_v50  ;;  %3054 = vmatmul.mubr.msk.f32.vlgmr.msra.gmra.mxu1 %vm42_vm1, %v3665_v50 }
 0x10c   :  { %3056 = vmatprep.subr.mxu0 %v3477_v0  ;;  %3067 = vmatprep.subr.mxu1 %v3477_v0 }
 0x10d   :  { %3057 = vmatpush3.msra.mxu0 %v3509_v1  ;;  %3068 = vmatpush3.msra.mxu1 %v3514_v2 }
 0x10e   :  { %3058 = vmatprep.subr.mxu0 %v3477_v0  ;;  %3069 = vmatprep.subr.mxu1 %v3477_v0 }
 0x10f   :  { %3059 = vmatpush3.msra.mxu0 %v3519_v3  ;;  %3070 = vmatpush3.msra.mxu1 %v3526_v4 }
 0x110   :  { %3060 = vmatprep.subr.mxu0 %v3477_v0  ;;  %3071 = vmatprep.subr.mxu1 %v3477_v0 }
 0x111   :  { %3061 = vmatpush3.msra.mxu0 %v3533_v5  ;;  %3072 = vmatpush3.msra.mxu1 %v3538_v6 }
 0x112   :  { %3062 = vmatprep.subr.mxu0 %v3477_v0  ;;  %3073 = vmatprep.subr.mxu1 %v3477_v0 }
 0x113   :  { %3063 = vmatpush3.msra.mxu0 %v3547_v7  ;;  %3074 = vmatpush3.msra.mxu1 %v3554_v8 }
 0x114   :  { %3064 = vmatprep.mubr.msk.f32.mxu0 %vm3478_vm0, %v3477_v0  ;;  %3075 = vmatprep.mubr.msk.f32.mxu1 %vm3478_vm0, %v3477_v0 }
 0x115   :  { %3078 = vmatprep.subr.mxu0 %v3477_v0  ;;  %3089 = vmatprep.subr.mxu1 %v3477_v0 }
 0x1c2   :  { %v431_v53 = vpop.f32.mrf.mxu0  ;;  %v510_v54 = vpop.f32.mrf.mxu1 }
 0x1c3   :  { %v435_v55 = vadd.f32 %v2724_v51, %v431_v53  ;;  %v514_v56 = vadd.f32 %v2727_v52, %v510_v54  ;;  %v2743_v51 = vld [vmem:[%s4167_s0 + $0x68] sm:$0xf] }
 0x1c4   :  { %v3022_v57 = vpop.f32.mrf.mxu0  ;;  %v3033_v58 = vpop.f32.mrf.mxu1 }
 0x1c5   :  { %v2726_v59 = vmul.f32 -1.442695, %v435_v55  ;;  %v2729_v60 = vmul.f32 -1.442695, %v514_v56  ;;  %v2741_v57 = vld [vmem:[%s4167_s0 + $0x48] sm:$0xf] }
 0x1c7   :  { %3349 = vpow2.f32 %v2726_v59 }
 0x1c8   :  { %3351 = vpow2.f32 %v2729_v60 }
 0x1cb   :  { %v589_v62 = vpop.f32.mrf.mxu0  ;;  %v663_v63 = vpop.f32.mrf.mxu1 }
 0x1cc   :  { %v667_v17 = vadd.f32 %v2732_v61, %v663_v63  ;;  %v593_v22 = vadd.f32 %v2730_v20, %v589_v62 }
 0x1cd   :  { %v3044_v18 = vpop.f32.mrf.mxu0  ;;  %v3055_v19 = vpop.f32.mrf.mxu1 }
 0x1ce   :  { %v2734_v21 = vmul.f32 -1.442695, %v667_v17 }
 0x1d0   :  { %3353 = vpow2.f32 %v2734_v21 }
 0x1d1   :  { %3355 = vtanh.f32 %v593_v22 }
 0x1d4   :  { %v3350_v23 = vpop.eup %3349 }
 0x1d5   :  { %v3352_v24 = vpop.eup %3351  ;;  %v439_v25 = vadd.f32 1.0, %v3350_v23 }
 0x1d6   :  { %v518_v26 = vadd.f32 1.0, %v3352_v24 }
 0x1d7   :  { %3357 = vrcp.f32 %v439_v25 }
 0x1d8   :  { %3359 = vrcp.f32 %v518_v26 }
 0x1dd   :  { %v3354_v27 = vpop.eup %3353 }
 0x1de   :  { %v3356_v28 = vpop.eup %3355  ;;  %v671_v32 = vadd.f32 1.0, %v3354_v27 }
 0x1e0   :  { %3361 = vrcp.f32 %v671_v32 }
 0x1e4   :  { %v3358_v29 = vpop.eup %3357 }
 0x1e5   :  { %v3360_v30 = vpop.eup %3359  ;;  %v675_v31 = vmul.f32 %v3358_v29, %v3356_v28 }
 0x1e6   :  { %v674_v33 = vmul.f32 %v3360_v30, %v3662_v47  ;;  %v2746_v30 = vld [vmem:[%s4167_s0 + $0xc] sm:$0xf] }
 0x1e8   :  { %v3728_v34 = vadd.f32 %v675_v31, %v674_v33  ;;  %v2749_v31 = vld [vmem:[%s4167_s0 + $0x2c] sm:$0xf] }
 0x1ea   :  { %3363 = vtanh.f32 %v3728_v34 }
 0x1ed   :  { %v3362_v35 = vpop.eup %3361 }
 0x1f7   :  { %v3364_v36 = vpop.eup %3363 }
 0x1f8   :  { %v678_v37 = vmul.f32 %v3364_v36, %v3362_v35 }
 0x1fa   :  { %3065 = vmatmul.mubr.msk.f32.vlgmr.msra.gmra.mxu0 %vm42_vm1, %v678_v37  ;;  %3076 = vmatmul.mubr.msk.f32.vlgmr.msra.gmra.mxu1 %vm42_vm1, %v678_v37  ;;  %v2595_v39 = vrot.slane %v678_v37, 2 }
 0x1fb   :  { %3079 = vmatpush3.msra.mxu0 %v3567_v9  ;;  %3090 = vmatpush3.msra.mxu1 %v3572_v10 }
 0x1fc   :  { %3080 = vmatprep.subr.mxu0 %v3477_v0  ;;  %3091 = vmatprep.subr.mxu1 %v3477_v0  ;;  %v3738_v40 = vsel %vm2608_vm2, %v2593_v38, %v2595_v39 }
 0x1fd   :  { %3081 = vmatpush3.msra.mxu0 %v3581_v11  ;;  %3092 = vmatpush3.msra.mxu1 %v3586_v12 }
 0x1fe   :  { %3082 = vmatprep.subr.mxu0 %v3477_v0  ;;  %3093 = vmatprep.subr.mxu1 %v3477_v0 }
 0x1ff   :  { %3083 = vmatpush3.msra.mxu0 %v3595_v13  ;;  %3094 = vmatpush3.msra.mxu1 %v3600_v14 }
 0x200   :  { %3084 = vmatprep.subr.mxu0 %v3477_v0  ;;  %3095 = vmatprep.subr.mxu1 %v3477_v0 }
 0x201   :  { %3085 = vmatpush3.msra.mxu0 %v3609_v15  ;;  %3086 = vmatprep.mubr.msk.f32.mxu0 %vm3478_vm0, %v3477_v0 }
 0x202   :  { %3096 = vmatpush3.msra.mxu1 %v3616_v16  ;;  %3097 = vmatprep.mubr.msk.f32.mxu1 %vm3478_vm0, %v3477_v0 }
 0x203   :  { %3087 = vmatmul.mubr.msk.f32.vlgmr.msra.gmra.mxu0 %vm42_vm1, %v678_v37  ;;  %3098 = vmatmul.mubr.msk.f32.vlgmr.msra.gmra.mxu1 %vm42_vm1, %v678_v37 }
 0x204   :  { %3100 = vmatprep.subr.mxu0 %v3477_v0  ;;  %3111 = vmatprep.subr.mxu1 %v3477_v0 }
 0x205   :  { %3101 = vmatpush3.msra.mxu0 %v3509_v1  ;;  %3112 = vmatpush3.msra.mxu1 %v3514_v2 }
 0x206   :  { %3102 = vmatprep.subr.mxu0 %v3477_v0  ;;  %3113 = vmatprep.subr.mxu1 %v3477_v0 }
 0x207   :  { %3103 = vmatpush3.msra.mxu0 %v3519_v3  ;;  %3114 = vmatpush3.msra.mxu1 %v3526_v4 }
 0x208   :  { %3104 = vmatprep.subr.mxu0 %v3477_v0  ;;  %3115 = vmatprep.subr.mxu1 %v3477_v0 }
 0x209   :  { %3105 = vmatpush3.msra.mxu0 %v3533_v5  ;;  %3116 = vmatpush3.msra.mxu1 %v3538_v6 }
 0x20a   :  { %3106 = vmatprep.subr.mxu0 %v3477_v0  ;;  %3117 = vmatprep.subr.mxu1 %v3477_v0 }
 0x20b   :  { %3107 = vmatpush3.msra.mxu0 %v3547_v7  ;;  %3118 = vmatpush3.msra.mxu1 %v3554_v8 }
 0x20c   :  { %3108 = vmatprep.mubr.msk.f32.mxu0 %vm3478_vm0, %v3477_v0  ;;  %3119 = vmatprep.mubr.msk.f32.mxu1 %vm3478_vm0, %v3477_v0 }
 0x20d   :  { %3122 = vmatprep.subr.mxu0 %v3477_v0  ;;  %3133 = vmatprep.subr.mxu1 %v3477_v0 }
 0x2ba   :  { %v750_v43 = vpop.f32.mrf.mxu0  ;;  %v829_v44 = vpop.f32.mrf.mxu1 }
 0x2bb   :  { %v754_v45 = vadd.f32 %v2735_v41, %v750_v43  ;;  %v833_v46 = vadd.f32 %v2738_v42, %v829_v44 }
 0x2bc   :  { %v3066_v47 = vpop.f32.mrf.mxu0  ;;  %v3077_v48 = vpop.f32.mrf.mxu1 }
 0x2bd   :  { %v2737_v49 = vmul.f32 -1.442695, %v754_v45  ;;  %v2740_v50 = vmul.f32 -1.442695, %v833_v46  ;;  %v2752_v46 = vld [vmem:[%s4167_s0 + $0x4c] sm:$0xf] }
 0x2bf   :  { %3365 = vpow2.f32 %v2737_v49 }
 0x2c0   :  { %3367 = vpow2.f32 %v2740_v50 }
 0x2c3   :  { %v908_v52 = vpop.f32.mrf.mxu0  ;;  %v982_v53 = vpop.f32.mrf.mxu1 }
 0x2c4   :  { %v986_v54 = vadd.f32 %v2743_v51, %v982_v53  ;;  %v912_v59 = vadd.f32 %v2741_v57, %v908_v52 }
 0x2c5   :  { %v3088_v55 = vpop.f32.mrf.mxu0  ;;  %v3099_v56 = vpop.f32.mrf.mxu1 }
 0x2c6   :  { %v2745_v58 = vmul.f32 -1.442695, %v986_v54 }
 0x2c8   :  { %3369 = vpow2.f32 %v2745_v58 }
 0x2c9   :  { %3371 = vtanh.f32 %v912_v59 }
 0x2cc   :  { %v3366_v60 = vpop.eup %3365 }
 0x2cd   :  { %v3368_v61 = vpop.eup %3367  ;;  %v758_v62 = vadd.f32 1.0, %v3366_v60 }
 0x2ce   :  { %v837_v63 = vadd.f32 1.0, %v3368_v61 }
 0x2cf   :  { %3373 = vrcp.f32 %v758_v62 }
 0x2d0   :  { %3375 = vrcp.f32 %v837_v63 }
 0x2d5   :  { %v3370_v17 = vpop.eup %3369 }
 0x2d6   :  { %v3372_v18 = vpop.eup %3371  ;;  %v990_v22 = vadd.f32 1.0, %v3370_v17 }
 0x2d8   :  { %3377 = vrcp.f32 %v990_v22 }
 0x2dc   :  { %v3374_v19 = vpop.eup %3373 }
 0x2dd   :  { %v3376_v20 = vpop.eup %3375  ;;  %v994_v21 = vmul.f32 %v3374_v19, %v3372_v18  ;;  %v2757_v18 = vld [vmem:[%s4167_s0 + $0x10] sm:$0xf] }
 0x2de   :  { %v993_v23 = vmul.f32 %v3376_v20, %v3728_v34  ;;  %v2760_v19 = vld [vmem:[%s4167_s0 + $0x30] sm:$0xf] }
 0x2e0   :  { %v3791_v24 = vadd.f32 %v994_v21, %v993_v23 }
 0x2e2   :  { %3379 = vtanh.f32 %v3791_v24 }
 0x2e5   :  { %v3378_v25 = vpop.eup %3377 }
 0x2ef   :  { %v3380_v26 = vpop.eup %3379 }
 0x2f0   :  { %v997_v27 = vmul.f32 %v3380_v26, %v3378_v25 }
 0x2f2   :  { %3109 = vmatmul.mubr.msk.f32.vlgmr.msra.gmra.mxu0 %vm42_vm1, %v997_v27  ;;  %3120 = vmatmul.mubr.msk.f32.vlgmr.msra.gmra.mxu1 %vm42_vm1, %v997_v27  ;;  %v2597_v28 = vrot.slane %v997_v27, 1 }
 0x2f3   :  { %3123 = vmatpush3.msra.mxu0 %v3567_v9  ;;  %3134 = vmatpush3.msra.mxu1 %v3572_v10 }
 0x2f4   :  { %3124 = vmatprep.subr.mxu0 %v3477_v0  ;;  %3135 = vmatprep.subr.mxu1 %v3477_v0  ;;  %v3801_v29 = vsel %vm2610_vm3, %v3738_v40, %v2597_v28  ;;  %v2754_v40 = vld [vmem:[%s4167_s0 + $0x6c] sm:$0xf]  ;;  %v2765_v28 = vld [vmem:[%s4167_s0 + $0x70] sm:$0xf] }
 0x2f5   :  { %3125 = vmatpush3.msra.mxu0 %v3581_v11  ;;  %3136 = vmatpush3.msra.mxu1 %v3586_v12 }
 0x2f6   :  { %3126 = vmatprep.subr.mxu0 %v3477_v0  ;;  %3137 = vmatprep.subr.mxu1 %v3477_v0 }
 0x2f7   :  { %3127 = vmatpush3.msra.mxu0 %v3595_v13  ;;  %3138 = vmatpush3.msra.mxu1 %v3600_v14 }
 0x2f8   :  { %3128 = vmatprep.subr.mxu0 %v3477_v0  ;;  %3139 = vmatprep.subr.mxu1 %v3477_v0 }
 0x2f9   :  { %3129 = vmatpush3.msra.mxu0 %v3609_v15  ;;  %3130 = vmatprep.mubr.msk.f32.mxu0 %vm3478_vm0, %v3477_v0 }
 0x2fa   :  { %3140 = vmatpush3.msra.mxu1 %v3616_v16  ;;  %3141 = vmatprep.mubr.msk.f32.mxu1 %vm3478_vm0, %v3477_v0 }
 0x2fb   :  { %3131 = vmatmul.mubr.msk.f32.vlgmr.msra.gmra.mxu0 %vm42_vm1, %v997_v27  ;;  %3142 = vmatmul.mubr.msk.f32.vlgmr.msra.gmra.mxu1 %vm42_vm1, %v997_v27 }
 0x2fc   :  { %3144 = vmatprep.subr.mxu0 %v3477_v0  ;;  %3155 = vmatprep.subr.mxu1 %v3477_v0 }
 0x2fd   :  { %3145 = vmatpush3.msra.mxu0 %v3509_v1  ;;  %3156 = vmatpush3.msra.mxu1 %v3514_v2 }
 0x2fe   :  { %3146 = vmatprep.subr.mxu0 %v3477_v0  ;;  %3157 = vmatprep.subr.mxu1 %v3477_v0 }
 0x2ff   :  { %3147 = vmatpush3.msra.mxu0 %v3519_v3  ;;  %3158 = vmatpush3.msra.mxu1 %v3526_v4 }
 0x300   :  { %3148 = vmatprep.subr.mxu0 %v3477_v0  ;;  %3159 = vmatprep.subr.mxu1 %v3477_v0 }
 0x301   :  { %3149 = vmatpush3.msra.mxu0 %v3533_v5  ;;  %3160 = vmatpush3.msra.mxu1 %v3538_v6 }
 0x302   :  { %3150 = vmatprep.subr.mxu0 %v3477_v0  ;;  %3161 = vmatprep.subr.mxu1 %v3477_v0 }
 0x303   :  { %3151 = vmatpush3.msra.mxu0 %v3547_v7  ;;  %3162 = vmatpush3.msra.mxu1 %v3554_v8 }
 0x304   :  { %3152 = vmatprep.mubr.msk.f32.mxu0 %vm3478_vm0, %v3477_v0  ;;  %3163 = vmatprep.mubr.msk.f32.mxu1 %vm3478_vm0, %v3477_v0 }
 0x305   :  { %3166 = vmatprep.subr.mxu0 %v3477_v0  ;;  %3177 = vmatprep.subr.mxu1 %v3477_v0 }
 0x3b2   :  { %v1069_v32 = vpop.f32.mrf.mxu0  ;;  %v1148_v33 = vpop.f32.mrf.mxu1 }
 0x3b3   :  { %v1073_v34 = vadd.f32 %v2746_v30, %v1069_v32  ;;  %v1152_v35 = vadd.f32 %v2749_v31, %v1148_v33 }
 0x3b4   :  { %v3110_v36 = vpop.f32.mrf.mxu0  ;;  %v3121_v37 = vpop.f32.mrf.mxu1 }
 0x3b5   :  { %v2748_v38 = vmul.f32 -1.442695, %v1073_v34  ;;  %v2751_v39 = vmul.f32 -1.442695, %v1152_v35  ;;  %v2763_v34 = vld [vmem:[%s4167_s0 + $0x50] sm:$0xf] }
 0x3b7   :  { %3381 = vpow2.f32 %v2748_v38 }
 0x3b8   :  { %3383 = vpow2.f32 %v2751_v39 }
 0x3bb   :  { %v1227_v41 = vpop.f32.mrf.mxu0  ;;  %v1301_v42 = vpop.f32.mrf.mxu1 }
 0x3bc   :  { %v1305_v43 = vadd.f32 %v2754_v40, %v1301_v42  ;;  %v1231_v48 = vadd.f32 %v2752_v46, %v1227_v41 }
 0x3bd   :  { %v3132_v44 = vpop.f32.mrf.mxu0  ;;  %v3143_v45 = vpop.f32.mrf.mxu1 }
 0x3be   :  { %v2756_v47 = vmul.f32 -1.442695, %v1305_v43 }
 0x3c0   :  { %3385 = vpow2.f32 %v2756_v47 }
 0x3c1   :  { %3387 = vtanh.f32 %v1231_v48 }
 0x3c4   :  { %v3382_v49 = vpop.eup %3381 }
 0x3c5   :  { %v3384_v50 = vpop.eup %3383  ;;  %v1077_v51 = vadd.f32 1.0, %v3382_v49 }
 0x3c6   :  { %v1156_v52 = vadd.f32 1.0, %v3384_v50 }
 0x3c7   :  { %3389 = vrcp.f32 %v1077_v51 }
 0x3c8   :  { %3391 = vrcp.f32 %v1156_v52 }
 0x3cd   :  { %v3386_v53 = vpop.eup %3385 }
 0x3ce   :  { %v3388_v54 = vpop.eup %3387  ;;  %v1309_v58 = vadd.f32 1.0, %v3386_v53 }
 0x3d0   :  { %3393 = vrcp.f32 %v1309_v58 }
 0x3d4   :  { %v3390_v55 = vpop.eup %3389 }
 0x3d5   :  { %v3392_v56 = vpop.eup %3391  ;;  %v1313_v57 = vmul.f32 %v3390_v55, %v3388_v54  ;;  %v2774_v54 = vld [vmem:[%s4167_s0 + $0x54] sm:$0xf] }
 0x3d6   :  { %v1312_v59 = vmul.f32 %v3392_v56, %v3791_v24 }
 0x3d8   :  { %v3854_v60 = vadd.f32 %v1313_v57, %v1312_v59 }
 0x3da   :  { %3395 = vtanh.f32 %v3854_v60 }
 0x3dd   :  { %v3394_v61 = vpop.eup %3393 }
 0x3e7   :  { %v3396_v62 = vpop.eup %3395 }
 0x3e8   :  { %v1316_v63 = vmul.f32 %v3396_v62, %v3394_v61 }
 0x3ea   :  { %3153 = vmatmul.mubr.msk.f32.vlgmr.msra.gmra.mxu0 %vm42_vm1, %v1316_v63  ;;  %3164 = vmatmul.mubr.msk.f32.vlgmr.msra.gmra.mxu1 %vm42_vm1, %v1316_v63  ;;  %v3860_v17 = vsel %vm2612_vm4, %v3801_v29, %v1316_v63 }
 0x3eb   :  { %3167 = vmatpush3.msra.mxu0 %v3567_v9  ;;  %3178 = vmatpush3.msra.mxu1 %v3572_v10 }
 0x3ec   :  { %3168 = vmatprep.subr.mxu0 %v3477_v0  ;;  %3179 = vmatprep.subr.mxu1 %v3477_v0 }
 0x3ed   :  { %3169 = vmatpush3.msra.mxu0 %v3581_v11  ;;  %3180 = vmatpush3.msra.mxu1 %v3586_v12 }
 0x3ee   :  { %3170 = vmatprep.subr.mxu0 %v3477_v0  ;;  %3181 = vmatprep.subr.mxu1 %v3477_v0 }
 0x3ef   :  { %3171 = vmatpush3.msra.mxu0 %v3595_v13  ;;  %3182 = vmatpush3.msra.mxu1 %v3600_v14 }
 0x3f0   :  { %3172 = vmatprep.subr.mxu0 %v3477_v0  ;;  %3183 = vmatprep.subr.mxu1 %v3477_v0 }
 0x3f1   :  { %3173 = vmatpush3.msra.mxu0 %v3609_v15  ;;  %3174 = vmatprep.mubr.msk.f32.mxu0 %vm3478_vm0, %v3477_v0 }
 0x3f2   :  { %3184 = vmatpush3.msra.mxu1 %v3616_v16  ;;  %3185 = vmatprep.mubr.msk.f32.mxu1 %vm3478_vm0, %v3477_v0 }
 0x3f3   :  { %3175 = vmatmul.mubr.msk.f32.vlgmr.msra.gmra.mxu0 %vm42_vm1, %v1316_v63  ;;  %3186 = vmatmul.mubr.msk.f32.vlgmr.msra.gmra.mxu1 %vm42_vm1, %v1316_v63 }
 0x3f4   :  { %3188 = vmatprep.subr.mxu0 %v3477_v0  ;;  %3199 = vmatprep.subr.mxu1 %v3477_v0 }
 0x3f5   :  { %3189 = vmatpush3.msra.mxu0 %v3509_v1  ;;  %3200 = vmatpush3.msra.mxu1 %v3514_v2 }
 0x3f6   :  { %3190 = vmatprep.subr.mxu0 %v3477_v0  ;;  %3201 = vmatprep.subr.mxu1 %v3477_v0 }
 0x3f7   :  { %3191 = vmatpush3.msra.mxu0 %v3519_v3  ;;  %3202 = vmatpush3.msra.mxu1 %v3526_v4 }
 0x3f8   :  { %3192 = vmatprep.subr.mxu0 %v3477_v0  ;;  %3203 = vmatprep.subr.mxu1 %v3477_v0 }
 0x3f9   :  { %3193 = vmatpush3.msra.mxu0 %v3533_v5  ;;  %3204 = vmatpush3.msra.mxu1 %v3538_v6 }
 0x3fa   :  { %3194 = vmatprep.subr.mxu0 %v3477_v0  ;;  %3205 = vmatprep.subr.mxu1 %v3477_v0 }
 0x3fb   :  { %3195 = vmatpush3.msra.mxu0 %v3547_v7  ;;  %3206 = vmatpush3.msra.mxu1 %v3554_v8 }
 0x3fc   :  { %3196 = vmatprep.mubr.msk.f32.mxu0 %vm3478_vm0, %v3477_v0  ;;  %3207 = vmatprep.mubr.msk.f32.mxu1 %vm3478_vm0, %v3477_v0 }
 0x3fd   :  { %3210 = vmatprep.subr.mxu0 %v3477_v0  ;;  %3221 = vmatprep.subr.mxu1 %v3477_v0 }
 0x4aa   :  { %v1388_v20 = vpop.f32.mrf.mxu0  ;;  %v1467_v21 = vpop.f32.mrf.mxu1 }
 0x4ab   :  { %v1392_v22 = vadd.f32 %v2757_v18, %v1388_v20  ;;  %v1471_v23 = vadd.f32 %v2760_v19, %v1467_v21 }
 0x4ac   :  { %v3154_v24 = vpop.f32.mrf.mxu0  ;;  %v3165_v25 = vpop.f32.mrf.mxu1 }
 0x4ad   :  { %v2759_v26 = vmul.f32 -1.442695, %v1392_v22  ;;  %v2762_v27 = vmul.f32 -1.442695, %v1471_v23 }
 0x4af   :  { %3397 = vpow2.f32 %v2759_v26  ;;  %v3988_v26 = vld [vmem:[%s4166_s1 + $0x58] sm:$0xff] }
 0x4b0   :  { %3399 = vpow2.f32 %v2762_v27  ;;  %v3994_v27 = vld [vmem:[%s4166_s1 + $0x78] sm:$0xff] }
 0x4b3   :  { %v1546_v29 = vpop.f32.mrf.mxu0  ;;  %v1620_v30 = vpop.f32.mrf.mxu1 }
 0x4b4   :  { %v1624_v31 = vadd.f32 %v2765_v28, %v1620_v30  ;;  %v1550_v36 = vadd.f32 %v2763_v34, %v1546_v29  ;;  %v4005_v29 = vld [vmem:[%s4166_s1 + $0x50] sm:$0xff]  ;;  %v4041_v34 = vld [vmem:[%s4166_s1 + $0x60] sm:$0xff] }
 0x4b5   :  { %v3176_v32 = vpop.f32.mrf.mxu0  ;;  %v3187_v33 = vpop.f32.mrf.mxu1  ;;  %v4011_v30 = vld [vmem:[%s4166_s1 + $0x70] sm:$0xff] }
 0x4b6   :  { %v2767_v35 = vmul.f32 -1.442695, %v1624_v31  ;;  %v4019_v31 = vld [vmem:[%s4166_s1 + $0x48] sm:$0xff]  ;;  %v4033_v33 = vld [vmem:[%s4166_s1 + $0x40] sm:$0xff] }
 0x4b7   :  { %v4025_v32 = vld [vmem:[%s4166_s1 + $0x68] sm:$0xff] }
 0x4b8   :  { %3401 = vpow2.f32 %v2767_v35  ;;  %v3469_v35 = vld [vmem:[%s4166_s1 + $0x18] sm:$0xff] }
 0x4b9   :  { %3403 = vtanh.f32 %v1550_v36  ;;  %v3470_v36 = vld [vmem:[%s4166_s1 + $0x38] sm:$0xff] }
 0x4bc   :  { %v3398_v37 = vpop.eup %3397 }
 0x4bd   :  { %v3400_v38 = vpop.eup %3399  ;;  %v1396_v39 = vadd.f32 1.0, %v3398_v37  ;;  %v3471_v37 = vld [vmem:[%s4166_s1 + $0x10] sm:$0xff] }
 0x4be   :  { %v1475_v40 = vadd.f32 1.0, %v3400_v38  ;;  %v3472_v38 = vld [vmem:[%s4166_s1 + $0x30] sm:$0xff] }
 0x4bf   :  { %3405 = vrcp.f32 %v1396_v39  ;;  %v3473_v39 = vld [vmem:[%s4166_s1 + $0x8] sm:$0xff] }
 0x4c0   :  { %3407 = vrcp.f32 %v1475_v40  ;;  %v3474_v40 = vld [vmem:[%s4166_s1 + $0x28] sm:$0xff] }
 0x4c5   :  { %v3402_v41 = vpop.eup %3401 }
 0x4c6   :  { %v3404_v42 = vpop.eup %3403  ;;  %v1628_v46 = vadd.f32 1.0, %v3402_v41  ;;  %v3475_v41 = vld [vmem:[%s4166_s1] sm:$0xff] }
 0x4c8   :  { %3409 = vrcp.f32 %v1628_v46 }
 0x4cc   :  { %v3406_v43 = vpop.eup %3405 }
 0x4cd   :  { %v3408_v44 = vpop.eup %3407  ;;  %v1632_v45 = vmul.f32 %v3406_v43, %v3404_v42  ;;  %v3476_v42 = vld [vmem:[%s4166_s1 + $0x20] sm:$0xff]  ;;  %v2779_v43 = vld [vmem:[%s4167_s0 + $0x18] sm:$0xf] }
 0x4ce   :  { %v1631_v47 = vmul.f32 %v3408_v44, %v3854_v60  ;;  %v2782_v44 = vld [vmem:[%s4167_s0 + $0x38] sm:$0xf] }
 0x4d0   :  { %v3917_v48 = vadd.f32 %v1632_v45, %v1631_v47 }
 0x4d2   :  { %3411 = vtanh.f32 %v3917_v48 }
 0x4d5   :  { %v3410_v49 = vpop.eup %3409 }
 0x4df   :  { %v3412_v50 = vpop.eup %3411 }
 0x4e0   :  { %v1635_v51 = vmul.f32 %v3412_v50, %v3410_v49 }
 0x4e2   :  { %3197 = vmatmul.mubr.msk.f32.vlgmr.msra.gmra.mxu0 %vm42_vm1, %v1635_v51  ;;  %3208 = vmatmul.mubr.msk.f32.vlgmr.msra.gmra.mxu1 %vm42_vm1, %v1635_v51  ;;  %v2599_v52 = vrot.slane %v1635_v51, 7 }
 0x4e3   :  { %3211 = vmatpush3.msra.mxu0 %v3567_v9  ;;  %3222 = vmatpush3.msra.mxu1 %v3572_v10 }
 0x4e4   :  { %3212 = vmatprep.subr.mxu0 %v3477_v0  ;;  %3223 = vmatprep.subr.mxu1 %v3477_v0  ;;  %v3927_v53 = vsel %vm2614_vm5, %v3860_v17, %v2599_v52 }
 0x4e5   :  { %3213 = vmatpush3.msra.mxu0 %v3581_v11  ;;  %3224 = vmatpush3.msra.mxu1 %v3586_v12  ;;  %v2776_v11 = vld [vmem:[%s4167_s0 + $0x74] sm:$0xf] }
 0x4e6   :  { %3214 = vmatprep.subr.mxu0 %v3477_v0  ;;  %3225 = vmatprep.subr.mxu1 %v3477_v0 }
 0x4e7   :  { %3215 = vmatpush3.msra.mxu0 %v3595_v13  ;;  %3226 = vmatpush3.msra.mxu1 %v3600_v14 }
 0x4e8   :  { %3216 = vmatprep.subr.mxu0 %v3477_v0  ;;  %3227 = vmatprep.subr.mxu1 %v3477_v0 }
 0x4e9   :  { %3217 = vmatpush3.msra.mxu0 %v3609_v15  ;;  %3218 = vmatprep.mubr.msk.f32.mxu0 %vm3478_vm0, %v3477_v0 }
 0x4ea   :  { %3228 = vmatpush3.msra.mxu1 %v3616_v16  ;;  %3229 = vmatprep.mubr.msk.f32.mxu1 %vm3478_vm0, %v3477_v0 }
 0x4eb   :  { %3219 = vmatmul.mubr.msk.f32.vlgmr.msra.gmra.mxu0 %vm42_vm1, %v1635_v51  ;;  %3230 = vmatmul.mubr.msk.f32.vlgmr.msra.gmra.mxu1 %vm42_vm1, %v1635_v51 }
 0x4ec   :  { %3232 = vmatprep.subr.mxu0 %v3477_v0  ;;  %3243 = vmatprep.subr.mxu1 %v3477_v0 }
 0x4ed   :  { %3233 = vmatpush3.msra.mxu0 %v3509_v1  ;;  %3244 = vmatpush3.msra.mxu1 %v3514_v2  ;;  %v2768_v1 = vld [vmem:[%s4167_s0 + $0x14] sm:$0xf] }
 0x4ee   :  { %3234 = vmatprep.subr.mxu0 %v3477_v0  ;;  %3245 = vmatprep.subr.mxu1 %v3477_v0  ;;  %v2771_v2 = vld [vmem:[%s4167_s0 + $0x34] sm:$0xf] }
 0x4ef   :  { %3235 = vmatpush3.msra.mxu0 %v3519_v3  ;;  %3246 = vmatpush3.msra.mxu1 %v3526_v4 }
 0x4f0   :  { %3236 = vmatprep.subr.mxu0 %v3477_v0  ;;  %3247 = vmatprep.subr.mxu1 %v3477_v0 }
 0x4f1   :  { %3237 = vmatpush3.msra.mxu0 %v3533_v5  ;;  %3248 = vmatpush3.msra.mxu1 %v3538_v6 }
 0x4f2   :  { %3238 = vmatprep.subr.mxu0 %v3477_v0  ;;  %3249 = vmatprep.subr.mxu1 %v3477_v0 }
 0x4f3   :  { %3239 = vmatpush3.msra.mxu0 %v3547_v7  ;;  %3250 = vmatpush3.msra.mxu1 %v3554_v8 }
 0x4f4   :  { %3240 = vmatprep.mubr.msk.f32.mxu0 %vm3478_vm0, %v3477_v0  ;;  %3251 = vmatprep.mubr.msk.f32.mxu1 %vm3478_vm0, %v3477_v0 }
 0x4f5   :  { %3254 = vmatprep.subr.mxu0 %v3477_v0  ;;  %3265 = vmatprep.subr.mxu1 %v3477_v0 }
 0x5a2   :  { %v1707_v3 = vpop.f32.mrf.mxu0  ;;  %v1786_v4 = vpop.f32.mrf.mxu1 }
 0x5a3   :  { %v1711_v5 = vadd.f32 %v2768_v1, %v1707_v3  ;;  %v1790_v6 = vadd.f32 %v2771_v2, %v1786_v4 }
 0x5a4   :  { %v3198_v7 = vpop.f32.mrf.mxu0  ;;  %v3209_v8 = vpop.f32.mrf.mxu1 }
 0x5a5   :  { %v2770_v9 = vmul.f32 -1.442695, %v1711_v5  ;;  %v2773_v10 = vmul.f32 -1.442695, %v1790_v6  ;;  %v2785_v6 = vld [vmem:[%s4167_s0 + $0x58] sm:$0xf] }
 0x5a7   :  { %3413 = vpow2.f32 %v2770_v9 }
 0x5a8   :  { %3415 = vpow2.f32 %v2773_v10 }
 0x5ab   :  { %v1865_v12 = vpop.f32.mrf.mxu0  ;;  %v1939_v13 = vpop.f32.mrf.mxu1 }
 0x5ac   :  { %v1943_v14 = vadd.f32 %v2776_v11, %v1939_v13  ;;  %v1869_v56 = vadd.f32 %v2774_v54, %v1865_v12 }
 0x5ad   :  { %v3220_v15 = vpop.f32.mrf.mxu0  ;;  %v3231_v16 = vpop.f32.mrf.mxu1 }
 0x5ae   :  { %v2778_v55 = vmul.f32 -1.442695, %v1943_v14 }
 0x5b0   :  { %3417 = vpow2.f32 %v2778_v55 }
 0x5b1   :  { %3419 = vtanh.f32 %v1869_v56 }
 0x5b4   :  { %v3414_v57 = vpop.eup %3413 }
 0x5b5   :  { %v3416_v58 = vpop.eup %3415  ;;  %v1715_v59 = vadd.f32 1.0, %v3414_v57 }
 0x5b6   :  { %v1794_v60 = vadd.f32 1.0, %v3416_v58 }
 0x5b7   :  { %3421 = vrcp.f32 %v1715_v59 }
 0x5b8   :  { %3423 = vrcp.f32 %v1794_v60 }
 0x5bd   :  { %v3418_v61 = vpop.eup %3417 }
 0x5be   :  { %v3420_v62 = vpop.eup %3419  ;;  %v1947_v19 = vadd.f32 1.0, %v3418_v61 }
 0x5c0   :  { %3425 = vrcp.f32 %v1947_v19  ;;  %v36_v19 = vld [vmem:[%s4168_s2] sm:$0xff] }
 0x5c4   :  { %v3422_v63 = vpop.eup %3421 }
 0x5c5   :  { %v3424_v17 = vpop.eup %3423  ;;  %v1951_v18 = vmul.f32 %v3422_v63, %v3420_v62  ;;  %v39_v63 = vld [vmem:[%s4168_s2 + $0x18] sm:$0xff] }
 0x5c6   :  { %v1950_v20 = vmul.f32 %v3424_v17, %v3917_v48  ;;  %v38_v17 = vld [vmem:[%s4168_s2 + $0x10] sm:$0xff] }
 0x5c8   :  { %v3980_v21 = vadd.f32 %v1951_v18, %v1950_v20  ;;  %v37_v18 = vld [vmem:[%s4168_s2 + $0x8] sm:$0xff]  ;;  %v2790_v20 = vld [vmem:[%s4167_s0 + $0x1c] sm:$0xf] }
 0x5ca   :  { %3427 = vtanh.f32 %v3980_v21 }
 0x5cd   :  { %v3426_v22 = vpop.eup %3425 }
 0x5d7   :  { %v3428_v23 = vpop.eup %3427 }
 0x5d8   :  { %v1954_v24 = vmul.f32 %v3428_v23, %v3426_v22 }
 0x5da   :  { %3241 = vmatmul.mubr.msk.f32.vlgmr.msra.gmra.mxu0 %vm42_vm1, %v1954_v24  ;;  %3252 = vmatmul.mubr.msk.f32.vlgmr.msra.gmra.mxu1 %vm42_vm1, %v1954_v24  ;;  %v2601_v25 = vrot.slane %v1954_v24, 6 }
 0x5db   :  { %3255 = vmatpush3.msra.mxu0 %v3988_v26  ;;  %3266 = vmatpush3.msra.mxu1 %v3994_v27 }
 0x5dc   :  { %3256 = vmatprep.subr.mxu0 %v3477_v0  ;;  %3267 = vmatprep.subr.mxu1 %v3477_v0  ;;  %v4000_v28 = vsel %vm2616_vm6, %v3927_v53, %v2601_v25  ;;  %v2787_v53 = vld [vmem:[%s4167_s0 + $0x78] sm:$0xf] }
 0x5dd   :  { %3257 = vmatpush3.msra.mxu0 %v4005_v29  ;;  %3268 = vmatpush3.msra.mxu1 %v4011_v30 }
 0x5de   :  { %3258 = vmatprep.subr.mxu0 %v3477_v0  ;;  %3269 = vmatprep.subr.mxu1 %v3477_v0 }
 0x5df   :  { %3259 = vmatpush3.msra.mxu0 %v4019_v31  ;;  %3270 = vmatpush3.msra.mxu1 %v4025_v32 }
 0x5e0   :  { %3260 = vmatprep.subr.mxu0 %v3477_v0  ;;  %3271 = vmatprep.subr.mxu1 %v3477_v0 }
 0x5e1   :  { %3261 = vmatpush3.msra.mxu0 %v4033_v33  ;;  %3262 = vmatprep.mubr.msk.f32.mxu0 %vm3478_vm0, %v3477_v0 }
 0x5e2   :  { %3272 = vmatpush3.msra.mxu1 %v4041_v34  ;;  %3273 = vmatprep.mubr.msk.f32.mxu1 %vm3478_vm0, %v3477_v0 }
 0x5e3   :  { %3263 = vmatmul.mubr.msk.f32.vlgmr.msra.gmra.mxu0 %vm42_vm1, %v1954_v24  ;;  %3274 = vmatmul.mubr.msk.f32.vlgmr.msra.gmra.mxu1 %vm42_vm1, %v1954_v24 }
 0x5e4   :  { %3276 = vmatprep.subr.mxu0 %v3477_v0  ;;  %3287 = vmatprep.subr.mxu1 %v3477_v0 }
 0x5e5   :  { %3277 = vmatpush3.msra.mxu0 %v3469_v35  ;;  %3288 = vmatpush3.msra.mxu1 %v3470_v36  ;;  %v2796_v35 = vld [vmem:[%s4167_s0 + $0x5c] sm:$0xf] }
 0x5e6   :  { %3278 = vmatprep.subr.mxu0 %v3477_v0  ;;  %3289 = vmatprep.subr.mxu1 %v3477_v0 }
 0x5e7   :  { %3279 = vmatpush3.msra.mxu0 %v3471_v37  ;;  %3290 = vmatpush3.msra.mxu1 %v3472_v38 }
 0x5e8   :  { %3280 = vmatprep.subr.mxu0 %v3477_v0  ;;  %3291 = vmatprep.subr.mxu1 %v3477_v0 }
 0x5e9   :  { %3281 = vmatpush3.msra.mxu0 %v3473_v39  ;;  %3292 = vmatpush3.msra.mxu1 %v3474_v40 }
 0x5ea   :  { %3282 = vmatprep.subr.mxu0 %v3477_v0  ;;  %3293 = vmatprep.subr.mxu1 %v3477_v0 }
 0x5eb   :  { %3283 = vmatpush3.msra.mxu0 %v3475_v41  ;;  %3294 = vmatpush3.msra.mxu1 %v3476_v42 }
 0x5ec   :  { %3284 = vmatprep.mubr.msk.f32.mxu0 %vm3478_vm0, %v3477_v0  ;;  %3295 = vmatprep.mubr.msk.f32.mxu1 %vm3478_vm0, %v3477_v0 }
 0x5ed   :  { %3298 = vmatprep.subr.mxu0 %v3477_v0  ;;  %3309 = vmatprep.subr.mxu1 %v3477_v0 }
 0x69a   :  { %v2026_v45 = vpop.f32.mrf.mxu0  ;;  %v2105_v46 = vpop.f32.mrf.mxu1 }
 0x69b   :  { %v2030_v47 = vadd.f32 %v2779_v43, %v2026_v45  ;;  %v2109_v48 = vadd.f32 %v2782_v44, %v2105_v46 }
 0x69c   :  { %v3242_v49 = vpop.f32.mrf.mxu0  ;;  %v3253_v50 = vpop.f32.mrf.mxu1 }
 0x69d   :  { %v2781_v51 = vmul.f32 -1.442695, %v2030_v47  ;;  %v2784_v52 = vmul.f32 -1.442695, %v2109_v48 }
 0x69f   :  { %3429 = vpow2.f32 %v2781_v51 }
 0x6a0   :  { %3431 = vpow2.f32 %v2784_v52 }
 0x6a3   :  { %v2184_v1 = vpop.f32.mrf.mxu0  ;;  %v2258_v2 = vpop.f32.mrf.mxu1 }
 0x6a4   :  { %v2262_v3 = vadd.f32 %v2787_v53, %v2258_v2  ;;  %v2188_v8 = vadd.f32 %v2785_v6, %v2184_v1  ;;  %v2801_v2 = vld [vmem:[%s4169_s3] ss:$0 sm:$0xff] }
 0x6a5   :  { %v3264_v4 = vpop.f32.mrf.mxu0  ;;  %v3275_v5 = vpop.f32.mrf.mxu1 }
 0x6a6   :  { %v2789_v7 = vmul.f32 -1.442695, %v2262_v3 }
 0x6a8   :  { %3433 = vpow2.f32 %v2789_v7 }
 0x6a9   :  { %3435 = vtanh.f32 %v2188_v8 }
 0x6ac   :  { %v3430_v9 = vpop.eup %3429 }
 0x6ad   :  { %v3432_v10 = vpop.eup %3431  ;;  %v2034_v11 = vadd.f32 1.0, %v3430_v9 }
 0x6ae   :  { %v2113_v12 = vadd.f32 1.0, %v3432_v10 }
 0x6af   :  { %3437 = vrcp.f32 %v2034_v11 }
 0x6b0   :  { %3439 = vrcp.f32 %v2113_v12 }
 0x6b5   :  { %v3434_v13 = vpop.eup %3433 }
 0x6b6   :  { %v3436_v14 = vpop.eup %3435  ;;  %v2266_v55 = vadd.f32 1.0, %v3434_v13 }
 0x6b8   :  { %3441 = vrcp.f32 %v2266_v55 }
 0x6bc   :  { %v3438_v15 = vpop.eup %3437 }
 0x6bd   :  { %v3440_v16 = vpop.eup %3439  ;;  %v2270_v54 = vmul.f32 %v3438_v15, %v3436_v14 }
 0x6be   :  { %v2269_v56 = vmul.f32 %v3440_v16, %v3980_v21  ;;  %v2793_v21 = vld [vmem:[%s4167_s0 + $0x3c] sm:$0xf] }
 0x6c0   :  { %v4099_v57 = vadd.f32 %v2270_v54, %v2269_v56 }
 0x6c2   :  { %3443 = vtanh.f32 %v4099_v57 }
 0x6c5   :  { %v3442_v58 = vpop.eup %3441 }
 0x6cf   :  { %v3444_v59 = vpop.eup %3443 }
 0x6d0   :  { %v2273_v60 = vmul.f32 %v3444_v59, %v3442_v58 }
 0x6d2   :  { %3285 = vmatmul.mubr.msk.f32.vlgmr.msra.gmra.mxu0 %vm42_vm1, %v2273_v60  ;;  %3296 = vmatmul.mubr.msk.f32.vlgmr.msra.gmra.mxu1 %vm42_vm1, %v2273_v60  ;;  %v2603_v61 = vrot.slane %v2273_v60, 5 }
 0x6d3   :  { %3299 = vmatpush3.msra.mxu0 %v3988_v26  ;;  %3310 = vmatpush3.msra.mxu1 %v3994_v27 }
 0x6d4   :  { %3300 = vmatprep.subr.mxu0 %v3477_v0  ;;  %3311 = vmatprep.subr.mxu1 %v3477_v0  ;;  %v4109_v62 = vsel %vm2618_vm7, %v4000_v28, %v2603_v61 }
 0x6d5   :  { %3301 = vmatpush3.msra.mxu0 %v4005_v29  ;;  %3312 = vmatpush3.msra.mxu1 %v4011_v30 }
 0x6d6   :  { %3302 = vmatprep.subr.mxu0 %v3477_v0  ;;  %3313 = vmatprep.subr.mxu1 %v3477_v0 }
 0x6d7   :  { %3303 = vmatpush3.msra.mxu0 %v4019_v31  ;;  %3314 = vmatpush3.msra.mxu1 %v4025_v32 }
 0x6d8   :  { %3304 = vmatprep.subr.mxu0 %v3477_v0  ;;  %3315 = vmatprep.subr.mxu1 %v3477_v0 }
 0x6d9   :  { %3305 = vmatpush3.msra.mxu0 %v4033_v33  ;;  %3306 = vmatprep.mubr.msk.f32.mxu0 %vm3478_vm0, %v3477_v0 }
 0x6da   :  { %3316 = vmatpush3.msra.mxu1 %v4041_v34  ;;  %3317 = vmatprep.mubr.msk.f32.mxu1 %vm3478_vm0, %v3477_v0 }
 0x6db   :  { %3307 = vmatmul.mubr.msk.f32.vlgmr.msra.gmra.mxu0 %vm42_vm1, %v2273_v60  ;;  %3318 = vmatmul.mubr.msk.f32.vlgmr.msra.gmra.mxu1 %vm42_vm1, %v2273_v60 }
 0x6dc   :  { %3320 = vmatprep.subr.mxu0 %v3477_v0  ;;  %3328 = vmatprep.mubr.msk.f32.mxu0 %vm3478_vm0, %v3477_v0 }
 0x6dd   :  { %3321 = vmatpush3.msra.mxu0 %v39_v63 }
 0x6de   :  { %3322 = vmatprep.subr.mxu0 %v3477_v0 }
 0x6df   :  { %3323 = vmatpush3.msra.mxu0 %v38_v17 }
 0x6e0   :  { %3324 = vmatprep.subr.mxu0 %v3477_v0 }
 0x6e1   :  { %3325 = vmatpush3.msra.mxu0 %v37_v18 }
 0x6e2   :  { %3326 = vmatprep.subr.mxu0 %v3477_v0  ;;  %v2798_v0 = vld [vmem:[%s4167_s0 + $0x7c] sm:$0xf] }
 0x6e3   :  { %3327 = vmatpush3.msra.mxu0 %v36_v19 }
 0x792   :  { %v2345_v22 = vpop.f32.mrf.mxu0  ;;  %v2424_v23 = vpop.f32.mrf.mxu1 }
 0x793   :  { %v2349_v24 = vadd.f32 %v2790_v20, %v2345_v22  ;;  %v2428_v25 = vadd.f32 %v2793_v21, %v2424_v23 }
 0x794   :  { %v3286_v26 = vpop.f32.mrf.mxu0  ;;  %v3297_v27 = vpop.f32.mrf.mxu1 }
 0x795   :  { %v2792_v28 = vmul.f32 -1.442695, %v2349_v24  ;;  %v2795_v29 = vmul.f32 -1.442695, %v2428_v25 }
 0x797   :  { %3445 = vpow2.f32 %v2792_v28 }
 0x798   :  { %3447 = vpow2.f32 %v2795_v29 }
 0x79b   :  { %v2503_v30 = vpop.f32.mrf.mxu0  ;;  %v2577_v31 = vpop.f32.mrf.mxu1 }
 0x79c   :  { %v2581_v32 = vadd.f32 %v2798_v0, %v2577_v31  ;;  %v2507_v37 = vadd.f32 %v2796_v35, %v2503_v30 }
 0x79d   :  { %v3308_v33 = vpop.f32.mrf.mxu0  ;;  %v3319_v34 = vpop.f32.mrf.mxu1 }
 0x79e   :  { %v2800_v36 = vmul.f32 -1.442695, %v2581_v32 }
 0x7a0   :  { %3449 = vpow2.f32 %v2800_v36 }
 0x7a1   :  { %3451 = vtanh.f32 %v2507_v37 }
 0x7a4   :  { %v3446_v38 = vpop.eup %3445 }
 0x7a5   :  { %v3448_v39 = vpop.eup %3447  ;;  %v2353_v40 = vadd.f32 1.0, %v3446_v38 }
 0x7a6   :  { %v2432_v41 = vadd.f32 1.0, %v3448_v39 }
 0x7a7   :  { %3453 = vrcp.f32 %v2353_v40 }
 0x7a8   :  { %3455 = vrcp.f32 %v2432_v41 }
 0x7ad   :  { %v3450_v42 = vpop.eup %3449 }
 0x7ae   :  { %v3452_v43 = vpop.eup %3451  ;;  %v2585_v47 = vadd.f32 1.0, %v3450_v42 }
 0x7b0   :  { %3457 = vrcp.f32 %v2585_v47 }
 0x7b4   :  { %v3454_v44 = vpop.eup %3453 }
 0x7b5   :  { %v3456_v45 = vpop.eup %3455  ;;  %v2589_v46 = vmul.f32 %v3454_v44, %v3452_v43 }
 0x7b6   :  { %v2588_v48 = vmul.f32 %v3456_v45, %v4099_v57 }
 0x7b8   :  { %v2590_v49 = vadd.f32 %v2589_v46, %v2588_v48 }
 0x7ba   :  { %3459 = vtanh.f32 %v2590_v49 }
 0x7bd   :  { %v3458_v50 = vpop.eup %3457 }
 0x7c7   :  { %v3460_v51 = vpop.eup %3459 }
 0x7c8   :  { %v2592_v52 = vmul.f32 %v3460_v51, %v3458_v50 }
 0x7ca   :  { %v2606_v53 = vrot.slane %v2592_v52, 4 }
 0x7cc   :  { %v2621_v1 = vsel %vm2620_vm8, %v4109_v62, %v2606_v53 }
 0x7cd   :  { %3329 = vmatmul.mubr.msk.f32.vlgmr.msra.gmra.mxu0 %vm42_vm1, %v2621_v1 }
 0x88d   :  { %v2697_v3 = vpop.f32.mrf.mxu0 }
 0x88e   :  { %v2698_v4 = vadd.f32 %v2801_v2, %v2697_v3 }
 0x88f   :  { %v3330_v5 = vpop.f32.mrf.mxu0 }
 0x890   :  { %2701 = vst [vmem:[%s4170_s4] sm:$0xff] %v2698_v4 }

</bundles_post_ra>
